<compile_context>
chip_gen: v6e
topology: v6e:2x2x1
jax: 0.10.0
libtpu: 0.0.40
codegen_flags: <defaults>
</compile_context>

<pallas_src>
import functools

import jax
import jax.numpy as jnp
import numpy as np
from jax import lax
from jax.experimental import pallas as pl
from jax.experimental.pallas import tpu as pltpu


def _round_up(x, m):
    return ((x + m - 1) // m) * m


def _ball_query_kernel(*refs, radius, num_neighbors, include_coordinates,
                       has_features, point_chunk):
    if has_features:
        points_ref, centers_ref, feats_ref, out_ref = refs
    else:
        points_ref, centers_ref, out_ref = refs
        feats_ref = None

    f32, bf16 = jnp.float32, jnp.bfloat16
    K = num_neighbors
    tn = point_chunk

    pc = points_ref[0].astype(f32)          # (3, N)
    cc = centers_ref[0].astype(f32)         # (3, TM)
    N = pc.shape[1]
    TM = cc.shape[1]
    r2 = radius * radius

    cct = jnp.transpose(cc)                 # (TM, 3) -- tiny transpose, hoisted

    # ---- values gathered per neighbor slot (+ a "ones" validity row) ------
    if has_features:
        ft = feats_ref[0].astype(f32)       # (C, N)
        parts = [pc, ft] if include_coordinates else [ft]
    else:
        parts = [pc]
    c_out = sum(p.shape[0] for p in parts)
    ones_row = jnp.ones((1, N), f32)
    vals_ext = jnp.concatenate(parts + [ones_row], axis=0)   # (c_out+1, N)
    c_tot = c_out + 1

    # Exact 3 x bf16 split of the gathered values: selectors are exactly 0/1
    # in bf16, so three bf16 MXU passes (f32 accumulation) reproduce the f32
    # gather exactly, without precision=HIGHEST f32 matmuls.
    v0 = vals_ext.astype(bf16)
    rem = vals_ext - v0.astype(f32)
    v1 = rem.astype(bf16)
    v2 = (rem - v1.astype(f32)).astype(bf16)
    val_pieces = (v0, v1, v2)

    n_chunks = N // tn
    # inclusive-prefix lower-triangular 0/1 matrix (TN, TN), bf16 (hoisted)
    tri = (lax.broadcasted_iota(jnp.int32, (tn, tn), 0) <=
           lax.broadcasted_iota(jnp.int32, (tn, tn), 1)).astype(bf16)

    carry = jnp.zeros((TM, 1), f32)           # running in-ball count / center
    g_acc = jnp.zeros((c_tot, K * TM), f32)   # gathered values, (c, k*TM + m)

    for c in range(n_chunks):
        lo = c * tn
        p_chunk = pc[:, lo:lo + tn]                       # (3, TN)

        # squared distance on the VPU only (matches reference summation order)
        d0 = cct[:, 0:1] - p_chunk[0:1, :]
        d1 = cct[:, 1:2] - p_chunk[1:2, :]
        d2 = cct[:, 2:3] - p_chunk[2:3, :]
        dist2 = d0 * d0 + d1 * d1 + d2 * d2               # (TM, TN)
        in_ball = dist2 < r2                               # (TM, TN) bool

        # blocked inclusive prefix count (exact small integers in f32)
        m_bf = in_ball.astype(bf16)
        csum = jnp.dot(m_bf, tri, preferred_element_type=f32) + carry
        carry = csum[:, tn - 1:tn]                         # (TM, 1)

        # one-hot selector for every neighbor slot, stacked to (K*TM, TN)
        sel_parts = []
        for k in range(K):
            sk = jnp.logical_and(in_ball, csum == float(k + 1))
            sel_parts.append(sk.astype(bf16))
        sel_bf = jnp.concatenate(sel_parts, axis=0)        # (K*TM, TN)

        # fused gather: one wide matmul per bf16 value piece
        for vp in val_pieces:
            g_acc = g_acc + lax.dot_general(
                vp[:, lo:lo + tn], sel_bf,
                dimension_numbers=(((1,), (1,)), ((), ())),
                preferred_element_type=f32)

    g3 = g_acc.reshape(c_tot, K, TM)
    gathered = g3[:c_out]                    # (c_out, K, TM)
    valid = g3[c_out:c_tot] > 0.5            # (1, K, TM): slot got a real point

    # Fallback blending on the small result (not on (M, N) selectors):
    #  - slots beyond the in-ball count repeat the first in-ball point,
    #  - an empty ball falls back to point index 0 (CUDA zero-init indices).
    first_point = vals_ext[:c_out, 0:1]                          # (c_out, 1)
    first_val = jnp.where(valid[:, 0, :], gathered[:, 0, :], first_point)
    out = jnp.where(valid, gathered, first_val[:, None, :])     # (c_out, K, TM)

    if include_coordinates:
        if has_features:
            ccpad = jnp.concatenate(
                [cc, jnp.zeros((c_out - 3, TM), f32)], axis=0)   # (c_out, TM)
        else:
            ccpad = cc
        out = out - ccpad[:, None, :]

    out_ref[0] = out.astype(out_ref.dtype)   # single lane-dense store


def ball_query_pallas(points_coords, centers_coords, points_features=None, *,
                      radius, num_neighbors, include_coordinates=True,
                      center_tile=128, point_chunk=256,
                      vmem_limit_bytes=48 * 1024 * 1024):
    B, three, N = points_coords.shape
    assert three == 3
    Bc, threec, M = centers_coords.shape
    assert Bc == B and threec == 3
    K = int(num_neighbors)
    has_features = points_features is not None
    if not has_features:
        assert include_coordinates, "No Features For Grouping"
        C = 0
        c_out = 3
    else:
        C = points_features.shape[1]
        c_out = (3 + C) if include_coordinates else C

    # ---- pad N (points) to a multiple of the in-kernel chunk size ---------
    # padded points sit far away (finite, so 0*huge stays 0 in the gather
    # matmul) and can never fall inside any ball.
    tn = min(_round_up(point_chunk, 128), _round_up(N, 128))
    n_pad = _round_up(N, tn)
    if n_pad != N:
        pad_pts = jnp.full((B, 3, n_pad - N), 1.0e18, points_coords.dtype)
        points_p = jnp.concatenate([points_coords, pad_pts], axis=2)
        feats_p = (jnp.concatenate(
            [points_features,
             jnp.zeros((B, C, n_pad - N), points_features.dtype)], axis=2)
            if has_features else None)
    else:
        points_p = points_coords
        feats_p = points_features

    # ---- pad M (centers) to a multiple of the center tile (lane-dense out) -
    tm = _round_up(center_tile, 128)
    m_pad = _round_up(M, tm)
    if m_pad != M:
        centers_p = jnp.concatenate(
            [centers_coords,
             jnp.zeros((B, 3, m_pad - M), centers_coords.dtype)], axis=2)
    else:
        centers_p = centers_coords

    kernel = functools.partial(
        _ball_query_kernel,
        radius=float(radius),
        num_neighbors=K,
        include_coordinates=bool(include_coordinates),
        has_features=has_features,
        point_chunk=tn,
    )

    in_specs = [
        pl.BlockSpec((1, 3, n_pad), lambda b, m: (b, 0, 0)),
        pl.BlockSpec((1, 3, tm), lambda b, m: (b, 0, m)),
    ]
    operands = [points_p, centers_p]
    if has_features:
        in_specs.append(pl.BlockSpec((1, C, n_pad), lambda b, m: (b, 0, 0)))
        operands.append(feats_p)

    out = pl.pallas_call(
        kernel,
        out_shape=jax.ShapeDtypeStruct((B, c_out, K, m_pad),
                                       points_coords.dtype),
        grid_spec=pltpu.PrefetchScalarGridSpec(
            num_scalar_prefetch=0,
            grid=(B, m_pad // tm),
            in_specs=in_specs,
            out_specs=pl.BlockSpec((1, c_out, K, tm),
                                   lambda b, m: (b, 0, 0, m)),
        ),
        compiler_params=pltpu.CompilerParams(
            dimension_semantics=("parallel", "parallel"),
            vmem_limit_bytes=vmem_limit_bytes),
    )(*operands)

    return out[..., :M] if m_pad != M else out


def ball_query_ref(points, centers, feats, radius, K, include_coordinates):
    """Pure numpy reference reproducing PVCNN's ball_query + grouping."""
    points = np.asarray(points, np.float32)
    centers = np.asarray(centers, np.float32)
    B, _, N = points.shape
    M = centers.shape[2]
    r2 = np.float32(radius) * np.float32(radius)
    idx = np.zeros((B, M, K), dtype=np.int64)
    for b in range(B):
        for m in range(M):
            cnt = 0
            for n in range(N):
                d = points[b, :, n] - centers[b, :, m]
                d2 = (d[0] * d[0] + d[1] * d[1]) + d[2] * d[2]   # f32 order
                if d2 < r2:
                    if cnt == 0:
                        idx[b, m, :] = n
                    idx[b, m, cnt] = n
                    cnt += 1
                    if cnt >= K:
                        break

    def group(x):  # (B, C, N) -> (B, C, M, K)
        out = np.zeros((x.shape[0], x.shape[1], M, K), x.dtype)
        for b in range(x.shape[0]):
            out[b] = x[b][:, idx[b]]
        return out

    gc = group(points) - centers[:, :, :, None]
    if feats is None:
        nf = gc
    else:
        gf = group(np.asarray(feats, np.float32))
        nf = np.concatenate([gc, gf], axis=1) if include_coordinates else gf
    return np.transpose(nf, (0, 1, 3, 2))  # (B, C_out, K, M)


if __name__ == "__main__":
    B, N, M, C, K = 2, 32, 16, 4, 8
    radius = 0.4

    key = jax.random.PRNGKey(0)
    k1, k2, k3 = jax.random.split(key, 3)
    points_coords = jax.random.uniform(k1, (B, 3, N), dtype=jnp.float32)
    centers_coords = jax.random.uniform(k2, (B, 3, M), dtype=jnp.float32)
    points_features = jax.random.normal(k3, (B, C, N), dtype=jnp.float32)

    # 1) coordinates + features
    out = ball_query_pallas(points_coords, centers_coords, points_features,
                            radius=radius, num_neighbors=K,
                            include_coordinates=True)
    out = jax.block_until_ready(out)
    ref = ball_query_ref(points_coords, centers_coords, points_features,
                         radius, K, True)
    assert out.shape == ref.shape == (B, 3 + C, K, M), (out.shape, ref.shape)
    np.testing.assert_allclose(np.asarray(out), ref, rtol=1e-6, atol=1e-6)

    # 2) coordinates only (points_features=None)
    out2 = ball_query_pallas(points_coords, centers_coords, None,
                             radius=radius, num_neighbors=K,
                             include_coordinates=True)
    out2 = jax.block_until_ready(out2)
    ref2 = ball_query_ref(points_coords, centers_coords, None, radius, K, True)
    np.testing.assert_allclose(np.asarray(out2), ref2, rtol=1e-6, atol=1e-6)

    # 3) features only, tiny radius -> exercises the empty-ball fallback
    out3 = ball_query_pallas(points_coords, centers_coords, points_features,
                             radius=0.1, num_neighbors=K,
                             include_coordinates=False)
    out3 = jax.block_until_ready(out3)
    ref3 = ball_query_ref(points_coords, centers_coords, points_features,
                          0.1, K, False)
    assert out3.shape == ref3.shape == (B, C, K, M)
    np.testing.assert_allclose(np.asarray(out3), ref3, rtol=1e-6, atol=1e-6)

    print("KERNEL_OK")
</pallas_src>

<mosaic_0001>
module attributes {stable_mosaic.version = 11 : i64} {
  func.func @_ball_query_kernel(%arg0: i32, %arg1: i32, %arg2: memref<1x3x128xf32, #tpu.memory_space<vmem>>, %arg3: memref<1x3x128xf32, #tpu.memory_space<vmem>>, %arg4: memref<1x4x128xf32, #tpu.memory_space<vmem>>, %arg5: memref<1x7x8x128xf32, #tpu.memory_space<vmem>>) attributes {dimension_semantics = [#tpu.dimension_semantics<parallel>, #tpu.dimension_semantics<parallel>], iteration_bounds = array<i64: 2, 1>, scalar_prefetch = 0 : i64, scratch_operands = 0 : i64, tpu.core_type = #tpu.core_type<tc>, window_params = [{transform_indices = @transform_0, window_bounds = array<i64: 1, 3, 128>}, {transform_indices = @transform_1, window_bounds = array<i64: 1, 3, 128>}, {transform_indices = @transform_2, window_bounds = array<i64: 1, 4, 128>}, {transform_indices = @transform_3, window_bounds = array<i64: 1, 7, 8, 128>}]} {
    %c0 = arith.constant 0 : index
    %c0_0 = arith.constant 0 : index
    %c0_1 = arith.constant 0 : index
    %0 = vector.load %arg2[%c0, %c0_0, %c0_1] : memref<1x3x128xf32, #tpu.memory_space<vmem>>, vector<1x3x128xf32>
    %1 = vector.shape_cast %0 : vector<1x3x128xf32> to vector<3x128xf32>
    %c0_2 = arith.constant 0 : index
    %c0_3 = arith.constant 0 : index
    %c0_4 = arith.constant 0 : index
    %2 = vector.load %arg3[%c0_2, %c0_3, %c0_4] : memref<1x3x128xf32, #tpu.memory_space<vmem>>, vector<1x3x128xf32>
    %3 = vector.shape_cast %2 : vector<1x3x128xf32> to vector<3x128xf32>
    %4 = tpu.transpose %3, [1, 0] : vector<3x128xf32> -> vector<128x3xf32>
    %c0_5 = arith.constant 0 : index
    %c0_6 = arith.constant 0 : index
    %c0_7 = arith.constant 0 : index
    %5 = vector.load %arg4[%c0_5, %c0_6, %c0_7] : memref<1x4x128xf32, #tpu.memory_space<vmem>>, vector<1x4x128xf32>
    %6 = vector.shape_cast %5 : vector<1x4x128xf32> to vector<4x128xf32>
    %cst = arith.constant 1.000000e+00 : f32
    %7 = vector.broadcast %cst : f32 to vector<1x128xf32>
    %8 = tpu.concatenate %1, %6, %7 in 0 : vector<3x128xf32>, vector<4x128xf32>, vector<1x128xf32> -> vector<8x128xf32>
    %9 = arith.truncf %8 : vector<8x128xf32> to vector<8x128xbf16>
    %10 = arith.extf %9 : vector<8x128xbf16> to vector<8x128xf32>
    %11 = arith.subf %8, %10 : vector<8x128xf32>
    %12 = arith.truncf %11 : vector<8x128xf32> to vector<8x128xbf16>
    %13 = arith.extf %12 : vector<8x128xbf16> to vector<8x128xf32>
    %14 = arith.subf %11, %13 : vector<8x128xf32>
    %15 = arith.truncf %14 : vector<8x128xf32> to vector<8x128xbf16>
    %16 = tpu.iota {dimensions = array<i32: 0>} : vector<128x128xi32>
    %17 = tpu.iota {dimensions = array<i32: 1>} : vector<128x128xi32>
    %18 = arith.cmpi sle, %16, %17 : vector<128x128xi32>
    %19 = arith.extui %18 : vector<128x128xi1> to vector<128x128xi32>
    %20 = arith.sitofp %19 : vector<128x128xi32> to vector<128x128xf32>
    %21 = arith.truncf %20 : vector<128x128xf32> to vector<128x128xbf16>
    %cst_8 = arith.constant 0.000000e+00 : f32
    %22 = vector.broadcast %cst_8 : f32 to vector<128x1xf32>
    %cst_9 = arith.constant 0.000000e+00 : f32
    %23 = vector.broadcast %cst_9 : f32 to vector<8x1024xf32>
    %24 = vector.extract_strided_slice %4 {offsets = [0, 0], sizes = [128, 1], strides = [1, 1]} : vector<128x3xf32> to vector<128x1xf32>
    %25 = vector.extract_strided_slice %1 {offsets = [0, 0], sizes = [1, 128], strides = [1, 1]} : vector<3x128xf32> to vector<1x128xf32>
    %26 = vector.broadcast %24 : vector<128x1xf32> to vector<128x128xf32>
    %27 = vector.broadcast %25 : vector<1x128xf32> to vector<128x128xf32>
    %28 = arith.subf %26, %27 : vector<128x128xf32>
    %29 = vector.extract_strided_slice %4 {offsets = [0, 1], sizes = [128, 1], strides = [1, 1]} : vector<128x3xf32> to vector<128x1xf32>
    %30 = vector.extract_strided_slice %1 {offsets = [1, 0], sizes = [1, 128], strides = [1, 1]} : vector<3x128xf32> to vector<1x128xf32>
    %31 = vector.broadcast %29 : vector<128x1xf32> to vector<128x128xf32>
    %32 = vector.broadcast %30 : vector<1x128xf32> to vector<128x128xf32>
    %33 = arith.subf %31, %32 : vector<128x128xf32>
    %34 = vector.extract_strided_slice %4 {offsets = [0, 2], sizes = [128, 1], strides = [1, 1]} : vector<128x3xf32> to vector<128x1xf32>
    %35 = vector.extract_strided_slice %1 {offsets = [2, 0], sizes = [1, 128], strides = [1, 1]} : vector<3x128xf32> to vector<1x128xf32>
    %36 = vector.broadcast %34 : vector<128x1xf32> to vector<128x128xf32>
    %37 = vector.broadcast %35 : vector<1x128xf32> to vector<128x128xf32>
    %38 = arith.subf %36, %37 : vector<128x128xf32>
    %39 = arith.mulf %28, %28 : vector<128x128xf32>
    %40 = arith.mulf %33, %33 : vector<128x128xf32>
    %41 = arith.addf %39, %40 : vector<128x128xf32>
    %42 = arith.mulf %38, %38 : vector<128x128xf32>
    %43 = arith.addf %41, %42 : vector<128x128xf32>
    %cst_10 = arith.constant 1.600000e-01 : f32
    %44 = vector.broadcast %cst_10 : f32 to vector<128x128xf32>
    %45 = arith.cmpf olt, %43, %44 : vector<128x128xf32>
    %46 = arith.extui %45 : vector<128x128xi1> to vector<128x128xi32>
    %47 = arith.sitofp %46 : vector<128x128xi32> to vector<128x128xf32>
    %48 = arith.truncf %47 : vector<128x128xf32> to vector<128x128xbf16>
    %cst_11 = arith.constant dense<0.000000e+00> : vector<128x128xf32>
    %49 = tpu.matmul %48, %21, %cst_11 {dimension_numbers = #tpu.dot_dimension_numbers<[1], [0], [0], [1], [0, 0, 1, 1], [], []>} : vector<128x128xbf16>, vector<128x128xbf16>, vector<128x128xf32> -> vector<128x128xf32>
    %50 = vector.broadcast %22 : vector<128x1xf32> to vector<128x128xf32>
    %51 = arith.addf %49, %50 : vector<128x128xf32>
    %cst_12 = arith.constant 1.000000e+00 : f32
    %52 = vector.broadcast %cst_12 : f32 to vector<128x128xf32>
    %53 = arith.cmpf oeq, %51, %52 : vector<128x128xf32>
    %54 = arith.andi %45, %53 : vector<128x128xi1>
    %55 = arith.extui %54 : vector<128x128xi1> to vector<128x128xi32>
    %56 = arith.sitofp %55 : vector<128x128xi32> to vector<128x128xf32>
    %57 = arith.truncf %56 : vector<128x128xf32> to vector<128x128xbf16>
    %cst_13 = arith.constant 2.000000e+00 : f32
    %58 = vector.broadcast %cst_13 : f32 to vector<128x128xf32>
    %59 = arith.cmpf oeq, %51, %58 : vector<128x128xf32>
    %60 = arith.andi %45, %59 : vector<128x128xi1>
    %61 = arith.extui %60 : vector<128x128xi1> to vector<128x128xi32>
    %62 = arith.sitofp %61 : vector<128x128xi32> to vector<128x128xf32>
    %63 = arith.truncf %62 : vector<128x128xf32> to vector<128x128xbf16>
    %cst_14 = arith.constant 3.000000e+00 : f32
    %64 = vector.broadcast %cst_14 : f32 to vector<128x128xf32>
    %65 = arith.cmpf oeq, %51, %64 : vector<128x128xf32>
    %66 = arith.andi %45, %65 : vector<128x128xi1>
    %67 = arith.extui %66 : vector<128x128xi1> to vector<128x128xi32>
    %68 = arith.sitofp %67 : vector<128x128xi32> to vector<128x128xf32>
    %69 = arith.truncf %68 : vector<128x128xf32> to vector<128x128xbf16>
    %cst_15 = arith.constant 4.000000e+00 : f32
    %70 = vector.broadcast %cst_15 : f32 to vector<128x128xf32>
    %71 = arith.cmpf oeq, %51, %70 : vector<128x128xf32>
    %72 = arith.andi %45, %71 : vector<128x128xi1>
    %73 = arith.extui %72 : vector<128x128xi1> to vector<128x128xi32>
    %74 = arith.sitofp %73 : vector<128x128xi32> to vector<128x128xf32>
    %75 = arith.truncf %74 : vector<128x128xf32> to vector<128x128xbf16>
    %cst_16 = arith.constant 5.000000e+00 : f32
    %76 = vector.broadcast %cst_16 : f32 to vector<128x128xf32>
    %77 = arith.cmpf oeq, %51, %76 : vector<128x128xf32>
    %78 = arith.andi %45, %77 : vector<128x128xi1>
    %79 = arith.extui %78 : vector<128x128xi1> to vector<128x128xi32>
    %80 = arith.sitofp %79 : vector<128x128xi32> to vector<128x128xf32>
    %81 = arith.truncf %80 : vector<128x128xf32> to vector<128x128xbf16>
    %cst_17 = arith.constant 6.000000e+00 : f32
    %82 = vector.broadcast %cst_17 : f32 to vector<128x128xf32>
    %83 = arith.cmpf oeq, %51, %82 : vector<128x128xf32>
    %84 = arith.andi %45, %83 : vector<128x128xi1>
    %85 = arith.extui %84 : vector<128x128xi1> to vector<128x128xi32>
    %86 = arith.sitofp %85 : vector<128x128xi32> to vector<128x128xf32>
    %87 = arith.truncf %86 : vector<128x128xf32> to vector<128x128xbf16>
    %cst_18 = arith.constant 7.000000e+00 : f32
    %88 = vector.broadcast %cst_18 : f32 to vector<128x128xf32>
    %89 = arith.cmpf oeq, %51, %88 : vector<128x128xf32>
    %90 = arith.andi %45, %89 : vector<128x128xi1>
    %91 = arith.extui %90 : vector<128x128xi1> to vector<128x128xi32>
    %92 = arith.sitofp %91 : vector<128x128xi32> to vector<128x128xf32>
    %93 = arith.truncf %92 : vector<128x128xf32> to vector<128x128xbf16>
    %cst_19 = arith.constant 8.000000e+00 : f32
    %94 = vector.broadcast %cst_19 : f32 to vector<128x128xf32>
    %95 = arith.cmpf oeq, %51, %94 : vector<128x128xf32>
    %96 = arith.andi %45, %95 : vector<128x128xi1>
    %97 = arith.extui %96 : vector<128x128xi1> to vector<128x128xi32>
    %98 = arith.sitofp %97 : vector<128x128xi32> to vector<128x128xf32>
    %99 = arith.truncf %98 : vector<128x128xf32> to vector<128x128xbf16>
    %100 = tpu.concatenate %57, %63, %69, %75, %81, %87, %93, %99 in 0 : vector<128x128xbf16>, vector<128x128xbf16>, vector<128x128xbf16>, vector<128x128xbf16>, vector<128x128xbf16>, vector<128x128xbf16>, vector<128x128xbf16>, vector<128x128xbf16> -> vector<1024x128xbf16>
    %cst_20 = arith.constant dense<0.000000e+00> : vector<8x1024xf32>
    %101 = tpu.matmul %9, %100, %cst_20 {dimension_numbers = #tpu.dot_dimension_numbers<[1], [1], [0], [0], [0, 0, 1, 0], [], []>} : vector<8x128xbf16>, vector<1024x128xbf16>, vector<8x1024xf32> -> vector<8x1024xf32>
    %102 = arith.addf %23, %101 : vector<8x1024xf32>
    %cst_21 = arith.constant dense<0.000000e+00> : vector<8x1024xf32>
    %103 = tpu.matmul %12, %100, %cst_21 {dimension_numbers = #tpu.dot_dimension_numbers<[1], [1], [0], [0], [0, 0, 1, 0], [], []>} : vector<8x128xbf16>, vector<1024x128xbf16>, vector<8x1024xf32> -> vector<8x1024xf32>
    %104 = arith.addf %102, %103 : vector<8x1024xf32>
    %cst_22 = arith.constant dense<0.000000e+00> : vector<8x1024xf32>
    %105 = tpu.matmul %15, %100, %cst_22 {dimension_numbers = #tpu.dot_dimension_numbers<[1], [1], [0], [0], [0, 0, 1, 0], [], []>} : vector<8x128xbf16>, vector<1024x128xbf16>, vector<8x1024xf32> -> vector<8x1024xf32>
    %106 = arith.addf %104, %105 : vector<8x1024xf32>
    %107 = vector.shape_cast %106 : vector<8x1024xf32> to vector<8x8x128xf32>
    %108 = vector.extract_strided_slice %107 {offsets = [0, 0, 0], sizes = [7, 8, 128], strides = [1, 1, 1]} : vector<8x8x128xf32> to vector<7x8x128xf32>
    %109 = vector.extract_strided_slice %107 {offsets = [7, 0, 0], sizes = [1, 8, 128], strides = [1, 1, 1]} : vector<8x8x128xf32> to vector<1x8x128xf32>
    %cst_23 = arith.constant 5.000000e-01 : f32
    %110 = vector.broadcast %cst_23 : f32 to vector<1x8x128xf32>
    %111 = arith.cmpf ogt, %109, %110 : vector<1x8x128xf32>
    %112 = vector.extract_strided_slice %8 {offsets = [0, 0], sizes = [7, 1], strides = [1, 1]} : vector<8x128xf32> to vector<7x1xf32>
    %113 = vector.extract_strided_slice %111 {offsets = [0, 0, 0], sizes = [1, 1, 128], strides = [1, 1, 1]} : vector<1x8x128xi1> to vector<1x1x128xi1>
    %114 = vector.shape_cast %113 : vector<1x1x128xi1> to vector<1x128xi1>
    %115 = vector.extract_strided_slice %108 {offsets = [0, 0, 0], sizes = [7, 1, 128], strides = [1, 1, 1]} : vector<7x8x128xf32> to vector<7x1x128xf32>
    %116 = vector.shape_cast %115 : vector<7x1x128xf32> to vector<7x128xf32>
    %117 = vector.shape_cast %114 : vector<1x128xi1> to vector<1x128xi1>
    %118 = vector.broadcast %117 : vector<1x128xi1> to vector<7x128xi1>
    %119 = vector.shape_cast %112 : vector<7x1xf32> to vector<7x1xf32>
    %120 = vector.broadcast %119 : vector<7x1xf32> to vector<7x128xf32>
    %121 = arith.select %118, %116, %120 : vector<7x128xi1>, vector<7x128xf32>
    %122 = vector.shape_cast %121 : vector<7x128xf32> to vector<7x1x128xf32>
    %123 = vector.shape_cast %111 : vector<1x8x128xi1> to vector<1x8x128xi1>
    %124 = vector.broadcast %123 : vector<1x8x128xi1> to vector<7x8x128xi1>
    %125 = vector.shape_cast %122 : vector<7x1x128xf32> to vector<7x1x128xf32>
    %126 = vector.broadcast %125 : vector<7x1x128xf32> to vector<7x8x128xf32>
    %127 = arith.select %124, %108, %126 : vector<7x8x128xi1>, vector<7x8x128xf32>
    %cst_24 = arith.constant 0.000000e+00 : f32
    %128 = vector.broadcast %cst_24 : f32 to vector<4x128xf32>
    %129 = tpu.concatenate %3, %128 in 0 : vector<3x128xf32>, vector<4x128xf32> -> vector<7x128xf32>
    %130 = vector.shape_cast %129 : vector<7x128xf32> to vector<7x1x128xf32>
    %131 = vector.broadcast %130 : vector<7x1x128xf32> to vector<7x8x128xf32>
    %132 = arith.subf %127, %131 : vector<7x8x128xf32>
    %c0_25 = arith.constant 0 : index
    %c0_26 = arith.constant 0 : index
    %c0_27 = arith.constant 0 : index
    %c0_28 = arith.constant 0 : index
    %133 = vector.load %arg5[%c0_25, %c0_26, %c0_27, %c0_28] : memref<1x7x8x128xf32, #tpu.memory_space<vmem>>, vector<1x7x8x128xf32>
    %134 = vector.shape_cast %133 : vector<1x7x8x128xf32> to vector<7x8x128xf32>
    %135 = vector.shape_cast %132 : vector<7x8x128xf32> to vector<1x7x8x128xf32>
    tpu.vector_store %arg5[%c0_25, %c0_26, %c0_27, %c0_28], %135 {strides = array<i32>} : memref<1x7x8x128xf32, #tpu.memory_space<vmem>>, vector<1x7x8x128xf32>,
    return
  }
  func.func @transform_0(%arg0: i32, %arg1: i32) -> (i32, i32, i32) {
    %c0_i32 = arith.constant 0 : i32
    %c0_i32_0 = arith.constant 0 : i32
    %c0_i32_1 = arith.constant 0 : i32
    return %arg0, %c0_i32, %c0_i32_0 : i32, i32, i32
  }
  func.func @transform_1(%arg0: i32, %arg1: i32) -> (i32, i32, i32) {
    %c0_i32 = arith.constant 0 : i32
    %c0_i32_0 = arith.constant 0 : i32
    return %arg0, %c0_i32, %arg1 : i32, i32, i32
  }
  func.func @transform_2(%arg0: i32, %arg1: i32) -> (i32, i32, i32) {
    %c0_i32 = arith.constant 0 : i32
    %c0_i32_0 = arith.constant 0 : i32
    %c0_i32_1 = arith.constant 0 : i32
    return %arg0, %c0_i32, %c0_i32_0 : i32, i32, i32
  }
  func.func @transform_3(%arg0: i32, %arg1: i32) -> (i32, i32, i32, i32) {
    %c0_i32 = arith.constant 0 : i32
    %c0_i32_0 = arith.constant 0 : i32
    %c0_i32_1 = arith.constant 0 : i32
    return %arg0, %c0_i32, %c0_i32_0, %arg1 : i32, i32, i32, i32
  }
}

</mosaic_0001>

<bundles_post_ra>
// kernel: tpu_custom_call.1
= control target key start
LH: loop header
LB: loop body
LE: loop exit
PB: predicated region body
PF: predicated region fallthrough
CT: control target
= control target key end

     0   :  { %8 = vsyncpa [#allocation3], 0  ;;  %s5388_s0 = inlined_call_operand.vmem [shape: f32[2,3,128], index: 0, kind: input, shape index: {}]   ;;  %s5389_s1 = inlined_call_operand.vmem [shape: f32[2,3,128], index: 1, kind: input, shape index: {}]   ;;  %s5390_s2 = inlined_call_operand.vmem [shape: f32[2,4,128], index: 2, kind: input, shape index: {}]   ;;  %s5391_s3 = inlined_call_operand.hbm [shape: f32[2,7,8,128], index: 3, kind: output, shape index: {}]  }
   0x1   :  { %10 = vsyncpa [#allocation3 + $0x1], 0  ;;  %s3406_s12 = smov 0   ;;  %s3408_s13 = smov 0  }
   0x2   :  { %s3410_s14 = smov 0   ;;  %s3412_s15 = smov 0  }
   0x3   :  { %s3414_s16 = smov 0   ;;  %s3416_s17 = smov 0  }
   0x4 LB: > { %s2338_s18 = sadd.s32 4294967295, %s3374_s17   ;;  %s2339_s19 = sadd.s32 4294967294, %s3374_s17   ;;  %s3374_s17 = sphi %s3416_s17, %s16_s17   ;;  %s3370_s16 = sphi %s3414_s16, %s6052_s16   ;;  %s3366_s15 = sphi %s3412_s15, %s6051_s15   ;;  %s3362_s14 = sphi %s3410_s14, %s6050_s14   ;;  %s3358_s13 = sphi %s3408_s13, %s6049_s13   ;;  %s3354_s12 = sphi %s3406_s12, %s6048_s12  }
   0x5   : > { %s28_s20 = sadd.s32 1, %s3370_s16  ;;  %s117_s21 = sadd.s32 1, %s3362_s14 }
   0x6   : > { %p30_p0 = scmp.ge.s32.totalorder %s28_s20, 2  ;;  %p127_p1 = scmp.ne.s32.totalorder %s3362_s14, %s3358_s13 }
   0x7   : > { %p128_p2 = scmp.eq.s32.totalorder %s2338_s18, 1  ;;  %p133_p3 = scmp.ne.s32.totalorder %s3358_s13, %s3354_s12 }
   0x8   : > { %s6054_s20 = smov (%p30_p0, %s28_s20), 0  ;;  %p134_p5 = scmp.eq.s32.totalorder %s2339_s19, 1 }
   0x9   : > { %p3446_p4 = por %p128_p2, %p127_p1  ;;  %s112_s23 = ssub.s32 %s3370_s16, %s6054_s20 }
   0xa   : > { %p2342_p6 = scmp.ge.s32.totalorder %s3374_s17, 1  ;;  %p115_p7 = scmp.eq.s32.totalorder %s112_s23, 0 }
   0xb   : > { %p3453_p8 = por %p134_p5, %p133_p3  ;;  %p176_p9 = scmp.lt.s32.totalorder %s3374_s17, 3 }
   0xc   : > { %s3459_s25 = scalar_select %p115_p7, %s3362_s14, %s117_s21  }
   0xd   : > { %p177_p10 = pnand %p2342_p6, %p176_p9 }
   0xf   : > { %180 = sbr.rel (%p177_p10) target bundleno = 1340 (0x53c), region = 32 }
  0x14   : > { %p210_p11 = scmp.lt.s32.totalorder %s3366_s15, 1  ;;  %v3376_v0 = vmov 1   ;;  %vm264_vm0 = vcmask 1042432   ;;  %vm266_vm1 = vcmask 1046528   ;;  %v3377_v12 = vmov 2   ;;  %s207_s10 = sand.u32 1, %s3358_s13  }
  0x15   : > { %3256 = vset.pattern.permute.xlu1 %v3376_v0  ;;  %v3378_v16 = vmov 0   ;;  %v275_v18 = vlaneseq  ;;  %v5446_v25 = vmov 1.0|1.0   ;;  %s3189_s11 = smul.u32 56, %s207_s10  ;;  %s3383_s29 = smov [#allocation2]  }
  0x16   : > { %s211_s26 = scalar_select %p210_p11, %s3366_s15, 1 }
  0x17   : > { %v3505_v20 = vshrl.u32 %v275_v18, 7  ;;  %v3509_v23 = vand.u32 127, %v275_v18  ;;  %s3190_s18 = smul.u32 896, %s3366_s15  ;;  %s209_s15 = scalar_lea.vmem [#allocation2], %s3189_s11 }
  0x18   : > { %s2343_s27 = sshll.u32 %s211_s26, 2  ;;  %s2239_s19 = sshll.u32 %s209_s15, 4  ;;  %s5339_s19 = int_to_ptr.vmem [resolvable:$true] %s2239_s19 }
  0x19   : > { %s220_s30 = scalar_lea.vmem %s5389_s1, %s2343_s27  ;;  %s224_s6 = scalar_lea.vmem %s5390_s2, %s2343_s27  ;;  %5535 = vst [vmem:[#allocation8_spill] sm:$0xff] %v3505_v20  ;;  %v290_v21 = vadd.s32 112, %v3505_v20  ;;  %v291_v22 = vadd.s32 120, %v3505_v20  ;;  %v288_v26 = vadd.s32 96, %v3505_v20  ;;  %v289_v27 = vadd.s32 104, %v3505_v20 }
  0x1a   : > { %v227_v1 = vld [vmem:[%s220_s30] sm:$0x7]  ;;  %s213_s9 = scalar_lea.vmem %s5388_s0, %s2343_s27  ;;  %v286_v29 = vadd.s32 80, %v3505_v20  ;;  %v287_v30 = vadd.s32 88, %v3505_v20  ;;  %v284_v32 = vadd.s32 64, %v3505_v20  ;;  %v285_v33 = vadd.s32 72, %v3505_v20  ;;  %s5337_s26 = scalar_lea.hbm %s5391_s3, %s3190_s18 }
  0x1b   : > { %v260_v2 = vld [vmem:[%s224_s6] sm:$0xf]  ;;  %228 = vxpose.xlu0.b32.start.end [1/1] (short) %v227_v1, 128  ;;  %v3473_v4 = vsel %vm264_vm0, %v227_v1, 0.0  ;;  %vm308_vm2 = vcmp.le.s32.totalorder %v290_v21, %v3509_v23  ;;  %vm309_vm3 = vcmp.le.s32.totalorder %v291_v22, %v3509_v23  ;;  %vm306_vm5 = vcmp.le.s32.totalorder %v288_v26, %v3509_v23  ;;  %s5343_s27 = scalar_lea.sflag [#allocation3], %s207_s10  ;;  %s3298_s28 = scalar_lea.vmem %s5339_s19, 896 }
  0x1c   : > { %v262_v3 = vrot.slane %v260_v2, 5  ;;  %5532 = vst [vmem:[#allocation5_spill] sm:$0xff] %v3473_v4  ;;  %v3475_v5 = vld [vmem:[%s213_s9] sm:$0x7]  ;;  %vm2378_vm4 = vmpackc.low %vm309_vm3, %vm308_vm2  ;;  %vm307_vm6 = vcmp.le.s32.totalorder %v289_v27, %v3509_v23  ;;  %vm304_vm8 = vcmp.le.s32.totalorder %v286_v29, %v3509_v23  ;;  %vm305_vm9 = vcmp.le.s32.totalorder %v287_v30, %v3509_v23  ;;  %p3299_p12 = scmp.ne.s32.totalorder %s5339_s19, %s3298_s28  ;;  %s3302_s30 = sshll.u32 %s3383_s29, 4  ;;  %s3303_s30 = int_to_ptr.vmem [resolvable:$false] %s3302_s30 }
  0x1d   : > { %3157 = vmatprep.subr.msk.bf16.mxu0 %vm2378_vm4, %v5446_v25  ;;  %vm2380_vm7 = vmpackc.low %vm307_vm6, %vm306_vm5  ;;  %vm302_vm11 = vcmp.le.s32.totalorder %v284_v32, %v3509_v23  ;;  %vm303_vm12 = vcmp.le.s32.totalorder %v285_v33, %v3509_v23  ;;  %v282_v35 = vadd.s32 48, %v3505_v20  ;;  %v283_v36 = vadd.s32 56, %v3505_v20  ;;  %s3304_s4 = scalar_lea.vmem %s3303_s30, 1792  ;;  %p3305_p1 = scmp.lt.s32.totalorder %s5339_s19, %s3303_s30 }
  0x1e   : > { %v265_v6 = vsel %vm264_vm0, %v3475_v5, %v262_v3  ;;  %3158 = vmatpush3.bf16.msk.msra.mxu0 %vm2378_vm4, %v5446_v25  ;;  %vm2382_vm10 = vmpackc.low %vm305_vm9, %vm304_vm8  ;;  %v280_v38 = vadd.s32 32, %v3505_v20  ;;  %v281_v39 = vadd.s32 40, %v3505_v20  ;;  %v278_v41 = vadd.s32 16, %v3505_v20  ;;  %p3300_p13 = pnand %p3299_p12, %p3446_p4  ;;  %p3306_p2 = scmp.lt.s32.totalorder %s3304_s4, %s3298_s28 }
  0x1f   : > { %v3478_v7 = vsel %vm266_vm1, %v265_v6, 1.0  ;;  %3159 = vmatprep.subr.msk.bf16.mxu0 %vm2380_vm7, %v5446_v25  ;;  %vm2384_vm13 = vmpackc.low %vm303_vm12, %vm302_vm11  ;;  %vm300_vm14 = vcmp.le.s32.totalorder %v282_v35, %v3509_v23  ;;  %vm301_vm15 = vcmp.le.s32.totalorder %v283_v36, %v3509_v23  ;;  %v279_v42 = vadd.s32 24, %v3505_v20 }
  0x20   : > { %v3482_v8 = vpack.c.bf16 %v3478_v7, %v3478_v7  ;;  %vm2386_vm0 = vmpackc.low %vm301_vm15, %vm300_vm14  ;;  %vm298_vm1 = vcmp.le.s32.totalorder %v280_v38, %v3509_v23  ;;  %vm299_vm2 = vcmp.le.s32.totalorder %v281_v39, %v3509_v23  ;;  %vm296_vm4 = vcmp.le.s32.totalorder %v278_v41, %v3509_v23  ;;  %p3301_p0 = pneg %p3300_p13  ;;  %p3307_p3 = por %p3306_p2, %p3305_p1 }
  0x21   : > { %vm2388_vm3 = vmpackc.low %vm299_vm2, %vm298_vm1  ;;  %vm297_vm5 = vcmp.le.s32.totalorder %v279_v42, %v3509_v23  ;;  %v277_v44 = vadd.s32 8, %v3505_v20  ;;  %v3643_v55 = vsub.s32 0, %v3505_v20  ;;  %v516_v56 = vsub.s32 1, %v3505_v20 }
  0x22   : > { %5533 = vst [vmem:[#allocation6_spill] sm:$0xff] %v3482_v8  ;;  %v269_v9 = vunpack.c.l.bf16 %v3482_v8  ;;  %3160 = vmatpush3.bf16.msk.msra.mxu0 %vm2380_vm7, %v5446_v25  ;;  %vm2390_vm6 = vmpackc.low %vm297_vm5, %vm296_vm4  ;;  %vm294_vm7 = vcmp.le.s32.totalorder %v3505_v20, %v3509_v23  ;;  %v600_v58 = vsub.s32 2, %v3505_v20  ;;  %v5662_v4 = vmov 0  ;;  %p3308_p5 = pnand %p3307_p3, %p3301_p0 }
  0x23   : > { %3161 = vmatprep.subr.msk.bf16.mxu0 %vm2382_vm10, %v5446_v25  ;;  %vm295_vm8 = vcmp.le.s32.totalorder %v277_v44, %v3509_v23  ;;  %5536 = vst [vmem:[#allocation9_spill] sm:$0xff] %v3643_v55  ;;  %v3650_v59 = vrot.slane %v3475_v5, %v3643_v55  ;;  %v3653_v60 = vrot.slane %v3475_v5, %v516_v56  ;;  %v5658_v55 = vmov 0 }
  0x24   : > { %v3486_v10 = vsub.f32 %v3478_v7, %v269_v9  ;;  %vm2392_vm9 = vmpackc.low %vm295_vm8, %vm294_vm7  ;;  %v3657_v62 = vrot.slane %v3475_v5, %v600_v58  ;;  %v5669_v20 = vmov 0  ;;  %v5682_v8 = vmov 1.0|1.0  }
  0x26   : > { %5534 = vst [vmem:[#allocation7_spill] sm:$0xff] %v3486_v10  ;;  %v3490_v11 = vpack.c.bf16 %v3486_v10, %v3486_v10  ;;  %3162 = vmatpush3.bf16.msk.msra.mxu0 %vm2382_vm10, %v5446_v25  ;;  %v5676_v10 = vmov 0 }
  0x27   : > { %3163 = vmatprep.subr.msk.bf16.mxu0 %vm2384_vm13, %v5446_v25 }
  0x28   : > { %2957 = vmatprep.mubr.bf16.mxu1 %v3490_v11 }
  0x2a   : > { %3164 = vmatpush3.bf16.msk.msra.mxu0 %vm2384_vm13, %v5446_v25 }
  0x2b   : > { %3165 = vmatprep.subr.msk.bf16.mxu0 %vm2386_vm0, %v5446_v25 }
  0x2e   : > { %3166 = vmatpush3.bf16.msk.msra.mxu0 %vm2386_vm0, %v5446_v25 }
  0x2f   : > { %3167 = vmatprep.subr.msk.bf16.mxu0 %vm2388_vm3, %v5446_v25 }
  0x32   : > { %3168 = vmatpush3.bf16.msk.msra.mxu0 %vm2388_vm3, %v5446_v25 }
  0x33   : > { %3169 = vmatprep.subr.msk.bf16.mxu0 %vm2390_vm6, %v5446_v25 }
  0x36   : > { %3170 = vmatpush3.bf16.msk.msra.mxu0 %vm2390_vm6, %v5446_v25 }
  0x37   : > { %3171 = vmatprep.subr.msk.bf16.mxu0 %vm2392_vm9, %v5446_v25 }
  0x3a   : > { %3172 = vmatpush3.bf16.msk.msra.mxu0 %vm2392_vm9, %v5446_v25 }
  0x44   : > { %3284 = vset.pattern.permute.xlu0 %v3377_v12 }
  0x97   : > { %v3494_v13 = vpop.trf.xlu0 }
  0x98   : > { %451 = vperm.xlu1 %3256, %v3494_v13  }
  0x9b   : > { %v245_v14 = vpop.trf.xlu0 }
  0x9c   : > { %3257 = vset.pattern.permute.xlu1 %v3377_v12 }
  0x9d   : > { %535 = vperm.xlu1 %3257, %v3494_v13  }
  0x9f   : > { %v246_v15 = vpop.trf.xlu0 }
  0xa1   : > { %3258 = vset.pattern.permute.xlu1 %v3378_v16 }
  0xa2   : > { %357 = vperm.xlu1 %3258, %v245_v14  }
  0xa3   : > { %v3500_v17 = vpop.trf.xlu0 }
  0xa6   : > { %3259 = vset.pattern.permute.xlu1 %v3376_v0 }
  0xa7   : > { %455 = vperm.xlu1 %3259, %v245_v14   ;;  %v3503_v19 = vpop.trf.xlu0 }
  0xab   : > { %3260 = vset.pattern.permute.xlu1 %v3377_v12  ;;  %v3512_v24 = vpop.trf.xlu0 }
  0xac   : > { %539 = vperm.xlu1 %3260, %v245_v14  }
  0xaf   : > { %v3519_v28 = vpop.trf.xlu0 }
  0xb0   : > { %3261 = vset.pattern.permute.xlu1 %v3378_v16 }
  0xb1   : > { %362 = vperm.xlu1 %3261, %v246_v15  }
  0xb3   : > { %v3528_v31 = vpop.trf.xlu0 }
  0xb5   : > { %3262 = vset.pattern.permute.xlu1 %v3376_v0 }
  0xb6   : > { %459 = vperm.xlu1 %3262, %v246_v15  }
  0xb7   : > { %v3537_v34 = vpop.trf.xlu0 }
  0xba   : > { %3263 = vset.pattern.permute.xlu1 %v3377_v12 }
  0xbb   : > { %543 = vperm.xlu1 %3263, %v246_v15   ;;  %v3546_v37 = vpop.trf.xlu0 }
  0xbc   : > { %571 = vperm.xlu0 %3284, %v3546_v37  }
  0xbf   : > { %3264 = vset.pattern.permute.xlu1 %v3378_v16  ;;  %v3556_v40 = vpop.trf.xlu0 }
  0xc0   : > { %367 = vperm.xlu1 %3264, %v3500_v17   ;;  %3285 = vset.pattern.permute.xlu0 %v3378_v16 }
  0xc1   : > { %352 = vperm.xlu0 %3285, %v3494_v13  }
  0xc3   : > { %v3567_v43 = vpop.trf.xlu0 }
  0xc4   : > { %3265 = vset.pattern.permute.xlu1 %v3376_v0 }
  0xc5   : > { %463 = vperm.xlu1 %3265, %v3500_v17   ;;  %402 = vperm.xlu0 %3285, %v3556_v40  }
  0xc7   : > { %v3577_v45 = vpop.trf.xlu0 }
  0xc9   : > { %3266 = vset.pattern.permute.xlu1 %v3377_v12  ;;  %412 = vperm.xlu0 %3285, %v3577_v45  }
  0xca   : > { %547 = vperm.xlu1 %3266, %v3500_v17  }
  0xcb   : > { %v3589_v46 = vpop.trf.xlu0 }
  0xcd   : > { %3289 = vset.pattern.permute.xlu0 %v3376_v0 }
  0xce   : > { %3267 = vset.pattern.permute.xlu1 %v3378_v16  ;;  %491 = vperm.xlu0 %3289, %v3556_v40  }
  0xcf   : > { %372 = vperm.xlu1 %3267, %v3503_v19   ;;  %v3596_v47 = vpop.trf.xlu0 }
  0xd2   : > { %503 = vperm.xlu0 %3289, %v3589_v46  }
  0xd3   : > { %3268 = vset.pattern.permute.xlu1 %v3376_v0  ;;  %v3606_v48 = vpop.trf.xlu0 }
  0xd4   : > { %467 = vperm.xlu1 %3268, %v3503_v19  }
  0xd6   : > { %507 = vperm.xlu0 %3289, %v3596_v47  }
  0xd8   : > { %3269 = vset.pattern.permute.xlu1 %v3377_v12 }
  0xd9   : > { %551 = vperm.xlu1 %3269, %v3503_v19  }
  0xda   : > { %3294 = vset.pattern.permute.xlu0 %v3377_v12 }
  0xdb   : > { %583 = vperm.xlu0 %3294, %v3577_v45  }
  0xdd   : > { %3270 = vset.pattern.permute.xlu1 %v3378_v16 }
  0xde   : > { %377 = vperm.xlu1 %3270, %v3512_v24  }
  0xdf   : > { %595 = vperm.xlu0 %3294, %v3606_v48  }
  0xe2   : > { %3271 = vset.pattern.permute.xlu1 %v3376_v0 }
  0xe3   : > { %471 = vperm.xlu1 %3271, %v3512_v24   ;;  %3297 = vset.pattern.permute.xlu0 %v3378_v16 }
  0xe7   : > { %3272 = vset.pattern.permute.xlu1 %v3377_v12 }
  0xe8   : > { %555 = vperm.xlu1 %3272, %v3512_v24  }
  0xec   : > { %3273 = vset.pattern.permute.xlu1 %v3378_v16 }
  0xed   : > { %382 = vperm.xlu1 %3273, %v3519_v28  }
  0xf1   : > { %3274 = vset.pattern.permute.xlu1 %v3376_v0 }
  0xf2   : > { %475 = vperm.xlu1 %3274, %v3519_v28  }
  0xf6   : > { %3275 = vset.pattern.permute.xlu1 %v3377_v12 }
  0xf7   : > { %559 = vperm.xlu1 %3275, %v3519_v28  }
  0xfb   : > { %3276 = vset.pattern.permute.xlu1 %v3378_v16 }
  0xfc   : > { %387 = vperm.xlu1 %3276, %v3528_v31  }
 0x100   : > { %3277 = vset.pattern.permute.xlu1 %v3376_v0 }
 0x101   : > { %479 = vperm.xlu1 %3277, %v3528_v31  }
 0x105   : > { %3278 = vset.pattern.permute.xlu1 %v3377_v12 }
 0x106   : > { %563 = vperm.xlu1 %3278, %v3528_v31  }
 0x10a   : > { %3279 = vset.pattern.permute.xlu1 %v3378_v16 }
 0x10b   : > { %392 = vperm.xlu1 %3279, %v3537_v34  }
 0x10f   : > { %3280 = vset.pattern.permute.xlu1 %v3376_v0 }
 0x110   : > { %483 = vperm.xlu1 %3280, %v3537_v34  }
 0x113   : > { %v452_v49 = vpop.permute.xlu1 %451 }
 0x114   : > { %3281 = vset.pattern.permute.xlu1 %v3377_v12  ;;  %v518_v6 = vsub.f32 %v452_v49, %v3653_v60 }
 0x115   : > { %567 = vperm.xlu1 %3281, %v3537_v34  }
 0x116   : > { %v634_v21 = vmul.f32 %v518_v6, %v518_v6 }
 0x118   : > { %v536_v50 = vpop.permute.xlu1 %535 }
 0x119   : > { %3282 = vset.pattern.permute.xlu1 %v3378_v16  ;;  %v602_v14 = vsub.f32 %v536_v50, %v3657_v62 }
 0x11a   : > { %397 = vperm.xlu1 %3282, %v3546_v37  }
 0x11b   : > { %v666_v28 = vmul.f32 %v602_v14, %v602_v14 }
 0x11d   : > { %v358_v51 = vpop.permute.xlu1 %357 }
 0x11e   : > { %3283 = vset.pattern.permute.xlu1 %v3376_v0  ;;  %v435_v2 = vsub.f32 %v358_v51, %v3650_v59 }
 0x11f   : > { %487 = vperm.xlu1 %3283, %v3546_v37  }
 0x120   : > { %v619_v15 = vmul.f32 %v435_v2, %v435_v2 }
 0x122   : > { %v456_v52 = vpop.permute.xlu1 %455 }
 0x123   : > { %3286 = vset.pattern.permute.xlu1 %v3378_v16  ;;  %v519_v63 = vsub.f32 %v456_v52, %v3653_v60 }
 0x124   : > { %407 = vperm.xlu1 %3286, %v3567_v43  }
 0x125   : > { %v635_v9 = vmul.f32 %v519_v63, %v519_v63 }
 0x127   : > { %v540_v53 = vpop.permute.xlu1 %539  ;;  %v651_v22 = vadd.f32 %v635_v9, %v619_v15 }
 0x128   : > { %3287 = vset.pattern.permute.xlu1 %v3376_v0  ;;  %v603_v3 = vsub.f32 %v540_v53, %v3657_v62 }
 0x129   : > { %495 = vperm.xlu1 %3287, %v3567_v43  }
 0x12a   : > { %v667_v17 = vmul.f32 %v603_v3, %v603_v3 }
 0x12c   : > { %v363_v54 = vpop.permute.xlu1 %362  ;;  %v3674_v29 = vadd.f32 %v667_v17, %v651_v22 }
 0x12d   : > { %3288 = vset.pattern.permute.xlu1 %v3377_v12  ;;  %v436_v24 = vsub.f32 %v363_v54, %v3650_v59 }
 0x12e   : > { %575 = vperm.xlu1 %3288, %v3556_v40   ;;  %vm5404_vm10 = vcmp.lt.f32.partialorder %v3674_v29, 0.16 }
 0x12f   : > { %v620_v35 = vmul.f32 %v436_v24, %v436_v24 }
 0x131   : > { %v460_v57 = vpop.permute.xlu1 %459 }
 0x132   : > { %579 = vperm.xlu1 %3288, %v3567_v43   ;;  %v520_v19 = vsub.f32 %v460_v57, %v3653_v60 }
 0x134   : > { %v636_v32 = vmul.f32 %v520_v19, %v520_v19 }
 0x136   : > { %v544_v61 = vpop.permute.xlu1 %543  ;;  %3290 = vset.pattern.permute.xlu1 %v3378_v16  ;;  %v652_v39 = vadd.f32 %v636_v32, %v620_v35 }
 0x137   : > { %417 = vperm.xlu1 %3290, %v3589_v46   ;;  %v3661_v1 = vpop.permute.xlu0 %571  ;;  %v604_v26 = vsub.f32 %v544_v61, %v3657_v62 }
 0x139   : > { %v668_v36 = vmul.f32 %v604_v26, %v604_v26 }
 0x13b   : > { %v368_v13 = vpop.permute.xlu1 %367  ;;  %3291 = vset.pattern.permute.xlu1 %v3376_v0  ;;  %v3690_v42 = vadd.f32 %v668_v36, %v652_v39 }
 0x13c   : > { %499 = vperm.xlu1 %3291, %v3577_v45   ;;  %v353_v5 = vpop.permute.xlu0 %352  ;;  %v437_v33 = vsub.f32 %v368_v13, %v3650_v59 }
 0x13d   : > { %v434_v18 = vsub.f32 %v353_v5, %v3650_v59  ;;  %vm5405_vm13 = vcmp.lt.f32.partialorder %v3690_v42, 0.16 }
 0x13e   : > { %v621_v40 = vmul.f32 %v437_v33, %v437_v33 }
 0x13f   : > { %v618_v23 = vmul.f32 %v434_v18, %v434_v18 }
 0x140   : > { %v464_v27 = vpop.permute.xlu1 %463  ;;  %3292 = vset.pattern.permute.xlu1 %v3378_v16 }
 0x141   : > { %v650_v30 = vadd.f32 %v634_v21, %v618_v23  ;;  %v521_v31 = vsub.f32 %v464_v27, %v3653_v60  ;;  %422 = vperm.xlu1 %3292, %v3596_v47  }
 0x143   : > { %v3679_v34 = vadd.f32 %v666_v28, %v650_v30  ;;  %v637_v37 = vmul.f32 %v521_v31, %v521_v31 }
 0x145   : > { %vm5414_vm11 = vcmp.lt.f32.partialorder %v3679_v34, 0.16  ;;  %v548_v38 = vpop.permute.xlu1 %547  ;;  %427 = vperm.xlu1 %3292, %v3606_v48   ;;  %v653_v43 = vadd.f32 %v637_v37, %v621_v40 }
 0x146   : > { %v605_v41 = vsub.f32 %v548_v38, %v3657_v62  ;;  %vm2394_vm12 = vmpackc.low %vm5404_vm10, %vm5414_vm11 }
 0x147   : > { %3173 = vmatprep.mubr.msk.bf16.mxu0 %vm2394_vm12, %v5446_v25 }
 0x148   : > { %v669_v44 = vmul.f32 %v605_v41, %v605_v41 }
 0x149   : > { %3293 = vset.pattern.permute.xlu1 %v3376_v0 }
 0x14a   : > { %v3693_v45 = vadd.f32 %v669_v44, %v653_v43  ;;  %v373_v49 = vpop.permute.xlu1 %372  ;;  %511 = vperm.xlu1 %3293, %v3606_v48  }
 0x14b   : > { %v438_v52 = vsub.f32 %v373_v49, %v3650_v59 }
 0x14c   : > { %vm5407_vm14 = vcmp.lt.f32.partialorder %v3693_v45, 0.16 }
 0x14d   : > { %vm2396_vm15 = vmpackc.low %vm5407_vm14, %vm5405_vm13  ;;  %v622_v57 = vmul.f32 %v438_v52, %v438_v52 }
 0x14e   : > { %3295 = vset.pattern.permute.xlu1 %v3377_v12  ;;  %3174 = vmatmul.mubr.msk.bf16.vlgmr.msra.gmra.mxu0 %vm2396_vm15, %v5446_v25 }
 0x14f   : > { %v468_v50 = vpop.permute.xlu1 %467  ;;  %587 = vperm.xlu1 %3295, %v3589_v46  }
 0x150   : > { %v522_v51 = vsub.f32 %v468_v50, %v3653_v60 }
 0x152   : > { %v638_v56 = vmul.f32 %v522_v51, %v522_v51 }
 0x153   : > { %591 = vperm.xlu1 %3295, %v3596_v47  }
 0x154   : > { %v552_v0 = vpop.permute.xlu1 %551 }
 0x155   : > { %v606_v53 = vsub.f32 %v552_v0, %v3657_v62  ;;  %v403_v0 = vpop.permute.xlu0 %402 }
 0x157   : > { %3296 = vset.pattern.permute.xlu1 %v3378_v16  ;;  %v670_v47 = vmul.f32 %v606_v53, %v606_v53  ;;  %v654_v16 = vadd.f32 %v638_v56, %v622_v57  ;;  %v611_v53 = vsub.f32 %v3661_v1, %v3657_v62 }
 0x158   : > { %2068 = vperm.xlu1 %3296, %v3478_v7  }
 0x159   : > { %v378_v48 = vpop.permute.xlu1 %377  ;;  %v3714_v2 = vadd.f32 %v670_v47, %v654_v16  ;;  %v413_v47 = vpop.permute.xlu0 %412 }
 0x15a   : > { %v439_v46 = vsub.f32 %v378_v48, %v3650_v59 }
 0x15b   : > { %vm5403_vm0 = vcmp.lt.f32.partialorder %v3714_v2, 0.16 }
 0x15c   : > { %v623_v63 = vmul.f32 %v439_v46, %v439_v46 }
 0x15d   : > { %v492_v1 = vpop.permute.xlu0 %491 }
 0x15e   : > { %v472_v12 = vpop.permute.xlu1 %471 }
 0x15f   : > { %v523_v54 = vsub.f32 %v472_v12, %v3653_v60 }
 0x161   : > { %v639_v58 = vmul.f32 %v523_v54, %v523_v54 }
 0x163   : > { %v556_v61 = vpop.permute.xlu1 %555  ;;  %v655_v3 = vadd.f32 %v639_v58, %v623_v63 }
 0x164   : > { %v607_v7 = vsub.f32 %v556_v61, %v3657_v62  ;;  %v675_v61 = vmul.f32 %v611_v53, %v611_v53 }
 0x166   : > { %v671_v6 = vmul.f32 %v607_v7, %v607_v7 }
 0x168   : > { %v3716_v9 = vadd.f32 %v671_v6, %v655_v3  ;;  %v383_v13 = vpop.permute.xlu1 %382 }
 0x169   : > { %v440_v18 = vsub.f32 %v383_v13, %v3650_v59  ;;  %v444_v13 = vsub.f32 %v403_v0, %v3650_v59 }
 0x16a   : > { %vm5402_vm1 = vcmp.lt.f32.partialorder %v3716_v9, 0.16 }
 0x16b   : > { %vm2398_vm2 = vmpackc.low %vm5402_vm1, %vm5403_vm0  ;;  %v624_v26 = vmul.f32 %v440_v18, %v440_v18 }
 0x16c   : > { %3177 = vmatprep.mubr.msk.bf16.mxu0 %vm2398_vm2, %v5446_v25 }
 0x16d   : > { %v476_v5 = vpop.permute.xlu1 %475 }
 0x16e   : > { %v524_v17 = vsub.f32 %v476_v5, %v3653_v60  ;;  %v528_v5 = vsub.f32 %v492_v1, %v3653_v60 }
 0x170   : > { %v640_v23 = vmul.f32 %v524_v17, %v524_v17  ;;  %v628_v17 = vmul.f32 %v444_v13, %v444_v13  ;;  %v644_v18 = vmul.f32 %v528_v5, %v528_v5 }
 0x172   : > { %v560_v14 = vpop.permute.xlu1 %559  ;;  %v656_v31 = vadd.f32 %v640_v23, %v624_v26  ;;  %v660_v26 = vadd.f32 %v644_v18, %v628_v17 }
 0x173   : > { %v608_v19 = vsub.f32 %v560_v14, %v3657_v62 }
 0x175   : > { %v672_v27 = vmul.f32 %v608_v19, %v608_v19 }
 0x177   : > { %v388_v15 = vpop.permute.xlu1 %387  ;;  %v3731_v35 = vadd.f32 %v672_v27, %v656_v31 }
 0x178   : > { %v441_v24 = vsub.f32 %v388_v15, %v3650_v59 }
 0x179   : > { %vm5401_vm3 = vcmp.lt.f32.partialorder %v3731_v35, 0.16 }
 0x17a   : > { %v625_v32 = vmul.f32 %v441_v24, %v441_v24 }
 0x17c   : > { %v480_v21 = vpop.permute.xlu1 %479 }
 0x17d   : > { %v525_v22 = vsub.f32 %v480_v21, %v3653_v60 }
 0x17f   : > { %v641_v28 = vmul.f32 %v525_v22, %v525_v22 }
 0x181   : > { %v564_v30 = vpop.permute.xlu1 %563  ;;  %v657_v36 = vadd.f32 %v641_v28, %v625_v32 }
 0x182   : > { %v609_v33 = vsub.f32 %v564_v30, %v3657_v62 }
 0x184   : > { %v673_v37 = vmul.f32 %v609_v33, %v609_v33 }
 0x186   : > { %v3733_v38 = vadd.f32 %v673_v37, %v657_v36  ;;  %v393_v39 = vpop.permute.xlu1 %392  ;;  %v504_v37 = vpop.permute.xlu0 %503 }
 0x187   : > { %v442_v49 = vsub.f32 %v393_v39, %v3650_v59 }
 0x188   : > { %vm5398_vm4 = vcmp.lt.f32.partialorder %v3733_v38, 0.16 }
 0x189   : > { %vm2400_vm5 = vmpackc.low %vm5398_vm4, %vm5401_vm3  ;;  %v626_v12 = vmul.f32 %v442_v49, %v442_v49  ;;  %v446_v49 = vsub.f32 %v413_v47, %v3650_v59 }
 0x18a   : > { %3178 = vmatmul.mubr.msk.bf16.gmra.mxu0 %vm2400_vm5, %v5446_v25 }
 0x18b   : > { %v484_v40 = vpop.permute.xlu1 %483  ;;  %v630_v53 = vmul.f32 %v446_v49, %v446_v49  ;;  %v5549_v49 = vmov 0 }
 0x18c   : > { %v526_v43 = vsub.f32 %v484_v40, %v3653_v60 }
 0x18e   : > { %v642_v48 = vmul.f32 %v526_v43, %v526_v43 }
 0x190   : > { %v568_v41 = vpop.permute.xlu1 %567  ;;  %v658_v46 = vadd.f32 %v642_v48, %v626_v12  ;;  %v531_v48 = vsub.f32 %v504_v37, %v3653_v60  ;;  %v5537_v37 = vmov 0 }
 0x191   : > { %v610_v50 = vsub.f32 %v568_v41, %v3657_v62  ;;  %v508_v41 = vpop.permute.xlu0 %507 }
 0x193   : > { %v674_v54 = vmul.f32 %v610_v50, %v610_v50 }
 0x195   : > { %v398_v44 = vpop.permute.xlu1 %397  ;;  %v3749_v16 = vadd.f32 %v674_v54, %v658_v46  ;;  %v584_v50 = vpop.permute.xlu0 %583  ;;  %v532_v46 = vsub.f32 %v508_v41, %v3653_v60  ;;  %v5541_v41 = vmov 0 }
 0x196   : > { %v443_v51 = vsub.f32 %v398_v44, %v3650_v59  ;;  %v614_v12 = vsub.f32 %v584_v50, %v3657_v62  ;;  %v5552_v50 = vmov 0 }
 0x197   : > { %vm5392_vm6 = vcmp.lt.f32.partialorder %v3749_v16, 0.16 }
 0x198   : > { %v627_v57 = vmul.f32 %v443_v51, %v443_v51  ;;  %v678_v1 = vmul.f32 %v614_v12, %v614_v12  ;;  %v5587_v12 = vmov 0 }
 0x19a   : > { %v488_v52 = vpop.permute.xlu1 %487 }
 0x19b   : > { %v527_v56 = vsub.f32 %v488_v52, %v3653_v60 }
 0x19d   : > { %v643_v58 = vmul.f32 %v527_v56, %v527_v56 }
 0x19f   : > { %v659_v63 = vadd.f32 %v643_v58, %v627_v57  ;;  %v408_v7 = vpop.permute.xlu1 %407  ;;  %v596_v58 = vpop.permute.xlu0 %595 }
 0x1a0   : > { %v445_v19 = vsub.f32 %v408_v7, %v3650_v59  ;;  %v617_v5 = vsub.f32 %v596_v58, %v3657_v62 }
 0x1a1   : > { %v3751_v3 = vadd.f32 %v675_v61, %v659_v63  ;;  %v647_v61 = vmul.f32 %v531_v48, %v531_v48  ;;  %v5559_v48 = vmov 0 }
 0x1a2   : > { %v629_v27 = vmul.f32 %v445_v19, %v445_v19 }
 0x1a3   : > { %vm5393_vm7 = vcmp.lt.f32.partialorder %v3751_v3, 0.16 }
 0x1a4   : > { %v496_v6 = vpop.permute.xlu1 %495  ;;  %vm2402_vm8 = vmpackc.low %vm5393_vm7, %vm5392_vm6 }
 0x1a5   : > { %3181 = vmatprep.mubr.msk.bf16.mxu0 %vm2402_vm8, %v5446_v25  ;;  %v529_v14 = vsub.f32 %v496_v6, %v3653_v60 }
 0x1a7   : > { %v645_v22 = vmul.f32 %v529_v14, %v529_v14 }
 0x1a9   : > { %v576_v15 = vpop.permute.xlu1 %575  ;;  %v661_v30 = vadd.f32 %v645_v22, %v629_v27 }
 0x1aa   : > { %v612_v21 = vsub.f32 %v576_v15, %v3657_v62  ;;  %v648_v15 = vmul.f32 %v532_v46, %v532_v46 }
 0x1ac   : > { %v676_v23 = vmul.f32 %v612_v21, %v612_v21 }
 0x1ad   : > { %v580_v24 = vpop.permute.xlu1 %579 }
 0x1ae   : > { %v613_v28 = vsub.f32 %v580_v24, %v3657_v62  ;;  %v3766_v31 = vadd.f32 %v676_v23, %v660_v26  ;;  %v681_v23 = vmul.f32 %v617_v5, %v617_v5 }
 0x1b0   : > { %v677_v32 = vmul.f32 %v613_v28, %v613_v28  ;;  %vm5397_vm9 = vcmp.lt.f32.partialorder %v3766_v31, 0.16 }
 0x1b2   : > { %v3768_v33 = vadd.f32 %v677_v32, %v661_v30  ;;  %v418_v36 = vpop.permute.xlu1 %417 }
 0x1b3   : > { %v447_v51 = vsub.f32 %v418_v36, %v3650_v59 }
 0x1b4   : > { %vm5394_vm12 = vcmp.lt.f32.partialorder %v3768_v33, 0.16 }
 0x1b5   : > { %vm2404_vm15 = vmpackc.low %vm5394_vm12, %vm5397_vm9  ;;  %v631_v47 = vmul.f32 %v447_v51, %v447_v51  ;;  %v5564_v51 = vmov 0 }
 0x1b6   : > { %3182 = vmatmul.mubr.msk.bf16.gmra.mxu0 %vm2404_vm15, %v5446_v25 }
 0x1b7   : > { %v500_v39 = vpop.permute.xlu1 %499  ;;  %v663_v18 = vadd.f32 %v647_v61, %v631_v47  ;;  %v5605_v61 = vmov 0  ;;  %v5609_v47 = vmov 0 }
 0x1b8   : > { %v530_v43 = vsub.f32 %v500_v39, %v3653_v60 }
 0x1ba   : > { %v646_v0 = vmul.f32 %v530_v43, %v530_v43  ;;  %v5543_v43 = vmov 0 }
 0x1bc   : > { %v423_v40 = vpop.permute.xlu1 %422  ;;  %v662_v57 = vadd.f32 %v646_v0, %v630_v53  ;;  %v5555_v0 = vmov 0  ;;  %v5573_v53 = vmov 0 }
 0x1bd   : > { %v448_v63 = vsub.f32 %v423_v40, %v3650_v59  ;;  %v5539_v40 = vmov 0 }
 0x1be   : > { %v3788_v17 = vadd.f32 %v678_v1, %v662_v57  ;;  %v5620_v1 = vmov 0 }
 0x1bf   : > { %v632_v19 = vmul.f32 %v448_v63, %v448_v63  ;;  %v5612_v63 = vmov 0 }
 0x1c0   : > { %v428_v44 = vpop.permute.xlu1 %427  ;;  %vm5396_vm2 = vcmp.lt.f32.partialorder %v3788_v17, 0.16 }
 0x1c1   : > { %v449_v56 = vsub.f32 %v428_v44, %v3650_v59  ;;  %v664_v26 = vadd.f32 %v648_v15, %v632_v19  ;;  %v5546_v44 = vmov 0 }
 0x1c3   : > { %v633_v13 = vmul.f32 %v449_v56, %v449_v56 }
 0x1c5   : > { %v512_v52 = vpop.permute.xlu1 %511 }
 0x1c6   : > { %v533_v54 = vsub.f32 %v512_v52, %v3653_v60  ;;  %v5569_v52 = vmov 0 }
 0x1c8   : > { %v649_v7 = vmul.f32 %v533_v54, %v533_v54  ;;  %v5592_v54 = vmov 0 }
 0x1ca   : > { %v588_v6 = vpop.permute.xlu1 %587  ;;  %v665_v60 = vadd.f32 %v649_v7, %v633_v13  ;;  %v5616_v7 = vmov 0 }
 0x1cb   : > { %v615_v14 = vsub.f32 %v588_v6, %v3657_v62 }
 0x1cc   : > { %v3794_v27 = vadd.f32 %v681_v23, %v665_v60  ;;  %v5632_v60 = vmov 0 }
 0x1cd   : > { %v679_v21 = vmul.f32 %v615_v14, %v615_v14  ;;  %v5624_v14 = vmov 0 }
 0x1ce   : > { %v592_v22 = vpop.permute.xlu1 %591  ;;  %vm5399_vm15 = vcmp.lt.f32.partialorder %v3794_v27, 0.16 }
 0x1cf   : > { %v3790_v24 = vadd.f32 %v679_v21, %v663_v18  ;;  %v616_v59 = vsub.f32 %v592_v22, %v3657_v62  ;;  %v5628_v18 = vmov 0  ;;  %v5665_v22 = vmov 0 }
 0x1d1   : > { %vm5395_vm5 = vcmp.lt.f32.partialorder %v3790_v24, 0.16  ;;  %v680_v28 = vmul.f32 %v616_v59, %v616_v59  ;;  %v5673_v59 = vmov 0 }
 0x1d2   : > { %vm2406_vm8 = vmpackc.low %vm5395_vm5, %vm5396_vm2 }
 0x1d3   : > { %v3801_v30 = vadd.f32 %v680_v28, %v664_v26  ;;  %3185 = vmatprep.mubr.msk.bf16.mxu0 %vm2406_vm8, %v5446_v25  ;;  %v5642_v26 = vmov 0  ;;  %v5645_v28 = vmov 0 }
 0x1d5   : > { %vm5400_vm6 = vcmp.lt.f32.partialorder %v3801_v30, 0.16 }
 0x1d6   : > { %vm2408_vm7 = vmpackc.low %vm5399_vm15, %vm5400_vm6 }
 0x1d7   : > { %3186 = vmatmul.mubr.msk.bf16.gmra.mxu0 %vm2408_vm7, %v5446_v25 }
 0x1d8   : > { %2975 = vmatprep.mubr.bf16.mxu0 %v3490_v11 }
 0x20e   : > { %v3175_v62 = vpop.f32.mrf.mxu0 }
 0x20f   : > { %vm925_vm12 = vcmp.eq.f32.partialorder %v3175_v62, 2.0  ;;  %vm1069_vm5 = vcmp.eq.f32.partialorder %v3175_v62, 4.0  ;;  %vm853_vm2 = vcmp.eq.f32.partialorder %v3175_v62, 1.0  ;;  %vm997_vm9 = vcmp.eq.f32.partialorder %v3175_v62, 3.0 }
 0x210   : > { %v3812_v32 = vpop.f32.mrf.mxu0  ;;  %vm941_vm8 = vmand %vm5405_vm13, %vm925_vm12 }
 0x211   : > { %vm1085_vm4 = vmand %vm5405_vm13, %vm1069_vm5 }
 0x212   : > { %v3176_v36 = vpop.f32.mrf.mxu0  ;;  %vm869_vm15 = vmand %vm5405_vm13, %vm853_vm2 }
 0x213   : > { %vm926_vm7 = vcmp.eq.f32.partialorder %v3176_v36, 2.0  ;;  %vm1070_vm6 = vcmp.eq.f32.partialorder %v3176_v36, 4.0  ;;  %vm1013_vm3 = vmand %vm5405_vm13, %vm997_vm9  ;;  %vm854_vm12 = vcmp.eq.f32.partialorder %v3176_v36, 1.0  ;;  %vm998_vm2 = vcmp.eq.f32.partialorder %v3176_v36, 3.0 }
 0x214   : > { %vm942_vm1 = vmand %vm5407_vm14, %vm926_vm7  ;;  %v3830_v39 = vpop.f32.mrf.mxu0 }
 0x215   : > { %vm3824_vm0 = vmpackc.low %vm942_vm1, %vm941_vm8  ;;  %vm923_vm1 = vcmp.eq.f32.partialorder %v3812_v32, 2.0 }
 0x216   : > { %v5538_v37 = vsel %vm3824_vm0, 4294967295, %v5537_v37  ;;  %vm1086_vm5 = vmand %vm5407_vm14, %vm1070_vm6  ;;  %vm924_vm6 = vcmp.eq.f32.partialorder %v3830_v39, 2.0 }
 0x217   : > { %vm3832_vm10 = vmpackc.low %vm1086_vm5, %vm1085_vm4 }
 0x218   : > { %v5540_v40 = vsel %vm3832_vm10, 4294967295, %v5539_v40  ;;  %vm870_vm9 = vmand %vm5407_vm14, %vm854_vm12  ;;  %vm1067_vm12 = vcmp.eq.f32.partialorder %v3812_v32, 4.0  ;;  %vm1357_vm10 = vcmp.eq.f32.partialorder %v3175_v62, 8.0 }
 0x219   : > { %vm3838_vm13 = vmpackc.low %vm870_vm9, %vm869_vm15  ;;  %vm5545_vm15 = vcmp.lt.f32.partialorder %v3674_v29, 0.16  ;;  %vm1068_vm9 = vcmp.eq.f32.partialorder %v3830_v39, 4.0 }
 0x21a   : > { %v5542_v41 = vsel %vm3838_vm13, 4294967295, %v5541_v41  ;;  %vm1014_vm8 = vmand %vm5407_vm14, %vm998_vm2  ;;  %vm851_vm2 = vcmp.eq.f32.partialorder %v3812_v32, 1.0 }
 0x21b   : > { %vm3846_vm7 = vmpackc.low %vm1014_vm8, %vm1013_vm3 }
 0x21c   : > { %v5544_v43 = vsel %vm3846_vm7, 4294967295, %v5543_v43  ;;  %vm939_vm4 = vmand %vm5414_vm11, %vm923_vm1  ;;  %vm852_vm1 = vcmp.eq.f32.partialorder %v3830_v39, 1.0 }
 0x21d   : > { %vm940_vm5 = vmand %vm5545_vm15, %vm924_vm6 }
 0x21e   : > { %vm3856_vm13 = vmpackc.low %vm940_vm5, %vm939_vm4  ;;  %vm995_vm4 = vcmp.eq.f32.partialorder %v3812_v32, 3.0 }
 0x21f   : > { %v5547_v44 = vsel %vm3856_vm13, 4294967295, %v5546_v44  ;;  %vm1083_vm3 = vmand %vm5414_vm11, %vm1067_vm12  ;;  %vm996_vm12 = vcmp.eq.f32.partialorder %v3830_v39, 3.0 }
 0x220   : > { %vm5548_vm8 = vmmov %vm5545_vm15 }
 0x221   : > { %vm1084_vm14 = vmand %vm5548_vm8, %vm1068_vm9  ;;  %vm1213_vm9 = vcmp.eq.f32.partialorder %v3175_v62, 6.0 }
 0x222   : > { %vm3866_vm7 = vmpackc.low %vm1084_vm14, %vm1083_vm3 }
 0x223   : > { %v5550_v49 = vsel %vm3866_vm7, 4294967295, %v5549_v49  ;;  %vm867_vm6 = vmand %vm5414_vm11, %vm851_vm2  ;;  %vm1214_vm7 = vcmp.eq.f32.partialorder %v3176_v36, 6.0 }
 0x224   : > { %vm5551_vm15 = vmmov %vm5548_vm8 }
 0x225   : > { %vm868_vm5 = vmand %vm5551_vm15, %vm852_vm1  ;;  %vm5557_vm1 = vcmp.lt.f32.partialorder %v3690_v42, 0.16  ;;  %v5578_v42 = vmov 0 }
 0x226   : > { %vm3876_vm13 = vmpackc.low %vm868_vm5, %vm867_vm6  ;;  %vm5558_vm6 = vcmp.lt.f32.partialorder %v3693_v45, 0.16  ;;  %v5582_v45 = vmov 0 }
 0x227   : > { %v5553_v50 = vsel %vm3876_vm13, 4294967295, %v5552_v50  ;;  %vm1011_vm14 = vmand %vm5414_vm11, %vm995_vm4  ;;  %vm1358_vm13 = vcmp.eq.f32.partialorder %v3176_v36, 8.0  ;;  %vm1142_vm11 = vcmp.eq.f32.partialorder %v3176_v36, 5.0 }
 0x228   : > { %vm5554_vm3 = vmmov %vm5548_vm8 }
 0x229   : > { %vm1012_vm8 = vmand %vm5554_vm3, %vm996_vm12  ;;  %vm1141_vm3 = vcmp.eq.f32.partialorder %v3175_v62, 5.0 }
 0x22a   : > { %vm3884_vm2 = vmpackc.low %vm1012_vm8, %vm1011_vm14 }
 0x22b   : > { %v5556_v0 = vsel %vm3884_vm2, 4294967295, %v5555_v0  ;;  %vm1229_vm15 = vmand %vm5557_vm1, %vm1213_vm9 }
 0x22c   : > { %vm1230_vm5 = vmand %vm5558_vm6, %vm1214_vm7 }
 0x22d   : > { %vm3892_vm0 = vmpackc.low %vm1230_vm5, %vm1229_vm15  ;;  %vm1286_vm5 = vcmp.eq.f32.partialorder %v3176_v36, 7.0  ;;  %v5655_v36 = vmov 0 }
 0x22e   : > { %v5560_v48 = vsel %vm3892_vm0, 4294967295, %v5559_v48  ;;  %vm5562_vm4 = vmmov %vm5557_vm1 }
 0x22f   : > { %5561 = vst [vmem:[#allocation10_spill] sm:$0xff] %v5560_v48  ;;  %vm1373_vm12 = vmand %vm5562_vm4, %vm1357_vm10 }
 0x230   : > { %vm5563_vm14 = vmmov %vm5558_vm6 }
 0x231   : > { %vm1374_vm8 = vmand %vm5563_vm14, %vm1358_vm13 }
 0x232   : > { %vm3900_vm2 = vmpackc.low %vm1374_vm8, %vm1373_vm12  ;;  %vm1212_vm8 = vcmp.eq.f32.partialorder %v3830_v39, 6.0 }
 0x233   : > { %v5565_v51 = vsel %vm3900_vm2, 4294967295, %v5564_v51  ;;  %vm5567_vm9 = vmmov %vm5557_vm1  ;;  %vm1285_vm1 = vcmp.eq.f32.partialorder %v3175_v62, 7.0  ;;  %v5649_v62 = vmov 0 }
 0x234   : > { %5566 = vst [vmem:[#allocation11_spill] sm:$0xff] %v5565_v51  ;;  %vm1157_vm7 = vmand %vm5567_vm9, %vm1141_vm3 }
 0x235   : > { %vm5568_vm15 = vmmov %vm5558_vm6 }
 0x236   : > { %vm1158_vm6 = vmand %vm5568_vm15, %vm1142_vm11  ;;  %vm5576_vm11 = vcmp.lt.f32.partialorder %v3679_v34, 0.16  ;;  %vm5577_vm15 = vcmp.lt.f32.partialorder %v3674_v29, 0.16  ;;  %v5597_v29 = vmov 0  ;;  %v5601_v34 = vmov 0 }
 0x237   : > { %vm3908_vm0 = vmpackc.low %vm1158_vm6, %vm1157_vm7  ;;  %vm1355_vm7 = vcmp.eq.f32.partialorder %v3812_v32, 8.0 }
 0x238   : > { %v5570_v52 = vsel %vm3908_vm0, 4294967295, %v5569_v52  ;;  %vm5571_vm10 = vmmov %vm5562_vm4  ;;  %vm1211_vm4 = vcmp.eq.f32.partialorder %v3812_v32, 6.0 }
 0x239   : > { %vm1301_vm13 = vmand %vm5571_vm10, %vm1285_vm1  ;;  %vm1356_vm1 = vcmp.eq.f32.partialorder %v3830_v39, 8.0 }
 0x23a   : > { %vm5572_vm12 = vmmov %vm5563_vm14 }
 0x23b   : > { %vm1302_vm14 = vmand %vm5572_vm12, %vm1286_vm5  ;;  %vm1139_vm12 = vcmp.eq.f32.partialorder %v3812_v32, 5.0 }
 0x23c   : > { %vm3918_vm3 = vmpackc.low %vm1302_vm14, %vm1301_vm13 }
 0x23d   : > { %v5574_v53 = vsel %vm3918_vm3, 4294967295, %v5573_v53  ;;  %vm1227_vm9 = vmand %vm5576_vm11, %vm1211_vm4  ;;  %vm1140_vm4 = vcmp.eq.f32.partialorder %v3830_v39, 5.0 }
 0x23e   : > { %5575 = vst [vmem:[#allocation12_spill] sm:$0xff] %v5574_v53  ;;  %vm1228_vm6 = vmand %vm5577_vm15, %vm1212_vm8  ;;  %v5736_v53 = vmov 0 }
 0x23f   : > { %vm3928_vm10 = vmpackc.low %vm1228_vm6, %vm1227_vm9 }
 0x240   : > { %v5579_v42 = vsel %vm3928_vm10, 4294967295, %v5578_v42  ;;  %vm5580_vm5 = vmmov %vm5576_vm11 }
 0x241   : > { %vm1371_vm13 = vmand %vm5580_vm5, %vm1355_vm7  ;;  %vm1284_vm7 = vcmp.eq.f32.partialorder %v3830_v39, 7.0 }
 0x242   : > { %vm5581_vm14 = vmmov %vm5577_vm15  ;;  %vm1283_vm15 = vcmp.eq.f32.partialorder %v3812_v32, 7.0  ;;  %v5651_v32 = vmov 0 }
 0x243   : > { %vm1372_vm3 = vmand %vm5581_vm14, %vm1356_vm1 }
 0x244   : > { %vm3938_vm11 = vmpackc.low %vm1372_vm3, %vm1371_vm13 }
 0x245   : > { %v5583_v45 = vsel %vm3938_vm11, 4294967295, %v5582_v45  ;;  %vm5585_vm8 = vmmov %vm5580_vm5 }
 0x246   : > { %5584 = vst [vmem:[#allocation13_spill] sm:$0xff] %v5583_v45  ;;  %vm1155_vm9 = vmand %vm5585_vm8, %vm1139_vm12  ;;  %v5733_v45 = vmov 0 }
 0x247   : > { %vm5586_vm6 = vmmov %vm5581_vm14 }
 0x248   : > { %vm1156_vm10 = vmand %vm5586_vm6, %vm1140_vm4  ;;  %vm5595_vm4 = vcmp.lt.f32.partialorder %v3714_v2, 0.16 }
 0x249   : > { %vm3948_vm5 = vmpackc.low %vm1156_vm10, %vm1155_vm9 }
 0x24a   : > { %v5588_v12 = vsel %vm3948_vm5, 4294967295, %v5587_v12  ;;  %vm5590_vm1 = vmmov %vm5585_vm8  ;;  %v3960_v56 = vpop.f32.mrf.mxu0 }
 0x24b   : > { %5589 = vst [vmem:[#allocation14_spill] sm:$0xff] %v5588_v12  ;;  %vm1299_vm3 = vmand %vm5590_vm1, %vm1283_vm15  ;;  %vm1217_vm9 = vcmp.eq.f32.partialorder %v3960_v56, 6.0  ;;  %vm5596_vm15 = vcmp.lt.f32.partialorder %v3716_v9, 0.16  ;;  %v5719_v12 = vmov 0 }
 0x24c   : > { %vm5591_vm13 = vmmov %vm5586_vm6  ;;  %v3962_v46 = vpop.f32.mrf.mxu0 }
 0x24d   : > { %vm1300_vm14 = vmand %vm5591_vm13, %vm1284_vm7  ;;  %vm999_vm10 = vcmp.eq.f32.partialorder %v3962_v46, 3.0 }
 0x24e   : > { %vm3956_vm11 = vmpackc.low %vm1300_vm14, %vm1299_vm3  ;;  %v3964_v57 = vpop.f32.mrf.mxu0  ;;  %vm5599_vm3 = vcmp.lt.f32.partialorder %v3731_v35, 0.16  ;;  %vm1361_vm14 = vcmp.eq.f32.partialorder %v3960_v56, 8.0 }
 0x24f   : > { %v5593_v54 = vsel %vm3956_vm11, 4294967295, %v5592_v54  ;;  %vm1015_vm8 = vmand %vm5595_vm4, %vm999_vm10  ;;  %vm1218_vm7 = vcmp.eq.f32.partialorder %v3964_v57, 6.0  ;;  %vm5600_vm11 = vcmp.lt.f32.partialorder %v3733_v38, 0.16  ;;  %vm1362_vm10 = vcmp.eq.f32.partialorder %v3964_v57, 8.0 }
 0x250   : > { %5594 = vst [vmem:[#allocation15_spill] sm:$0xff] %v5593_v54  ;;  %v3966_v58 = vpop.f32.mrf.mxu0  ;;  %vm1233_vm13 = vmand %vm5599_vm3, %vm1217_vm9  ;;  %vm1146_vm9 = vcmp.eq.f32.partialorder %v3964_v57, 5.0  ;;  %v5699_v54 = vmov 0 }
 0x251   : > { %vm1000_vm12 = vcmp.eq.f32.partialorder %v3966_v58, 3.0  ;;  %vm1234_vm5 = vmand %vm5600_vm11, %vm1218_vm7  ;;  %vm1289_vm7 = vcmp.eq.f32.partialorder %v3960_v56, 7.0 }
 0x252   : > { %vm1016_vm6 = vmand %vm5596_vm15, %vm1000_vm12  ;;  %vm1145_vm15 = vcmp.eq.f32.partialorder %v3960_v56, 5.0 }
 0x253   : > { %vm3976_vm1 = vmpackc.low %vm1016_vm6, %vm1015_vm8 }
 0x254   : > { %v5598_v29 = vsel %vm3976_vm1, 4294967295, %v5597_v29  ;;  %vm3986_vm4 = vmpackc.low %vm1234_vm5, %vm1233_vm13 }
 0x255   : > { %v5602_v34 = vsel %vm3986_vm4, 4294967295, %v5601_v34  ;;  %vm5603_vm12 = vmmov %vm5599_vm3 }
 0x256   : > { %vm1377_vm8 = vmand %vm5603_vm12, %vm1361_vm14  ;;  %vm1290_vm14 = vcmp.eq.f32.partialorder %v3964_v57, 7.0 }
 0x257   : > { %vm5604_vm6 = vmmov %vm5600_vm11 }
 0x258   : > { %vm1378_vm0 = vmand %vm5604_vm6, %vm1362_vm10 }
 0x259   : > { %vm3996_vm3 = vmpackc.low %vm1378_vm0, %vm1377_vm8  ;;  %vm1215_vm8 = vcmp.eq.f32.partialorder %v3962_v46, 6.0 }
 0x25a   : > { %v5606_v61 = vsel %vm3996_vm3, 4294967295, %v5605_v61  ;;  %vm5607_vm11 = vmmov %vm5603_vm12 }
 0x25b   : > { %vm1161_vm5 = vmand %vm5607_vm11, %vm1145_vm15  ;;  %vm1216_vm15 = vcmp.eq.f32.partialorder %v3966_v58, 6.0 }
 0x25c   : > { %vm5608_vm13 = vmmov %vm5604_vm6 }
 0x25d   : > { %vm1162_vm2 = vmand %vm5608_vm13, %vm1146_vm9  ;;  %vm5614_vm9 = vcmp.lt.f32.partialorder %v3714_v2, 0.16  ;;  %vm5615_vm13 = vcmp.lt.f32.partialorder %v3716_v9, 0.16 }
 0x25e   : > { %vm4006_vm12 = vmpackc.low %vm1162_vm2, %vm1161_vm5  ;;  %vm1359_vm5 = vcmp.eq.f32.partialorder %v3962_v46, 8.0 }
 0x25f   : > { %v5610_v47 = vsel %vm4006_vm12, 4294967295, %v5609_v47  ;;  %vm5611_vm10 = vmmov %vm5607_vm11 }
 0x260   : > { %vm1305_vm0 = vmand %vm5611_vm10, %vm1289_vm7  ;;  %vm1360_vm7 = vcmp.eq.f32.partialorder %v3966_v58, 8.0 }
 0x261   : > { %vm1306_vm3 = vmand %vm5604_vm6, %vm1290_vm14 }
 0x262   : > { %vm4016_vm11 = vmpackc.low %vm1306_vm3, %vm1305_vm0 }
 0x263   : > { %v5613_v63 = vsel %vm4016_vm11, 4294967295, %v5612_v63  ;;  %vm1231_vm2 = vmand %vm5614_vm9, %vm1215_vm8 }
 0x264   : > { %vm1232_vm12 = vmand %vm5615_vm13, %vm1216_vm15  ;;  %vm5622_vm15 = vcmp.lt.f32.partialorder %v3766_v31, 0.16 }
 0x265   : > { %vm4026_vm10 = vmpackc.low %vm1232_vm12, %vm1231_vm2 }
 0x266   : > { %v5617_v7 = vsel %vm4026_vm10, 4294967295, %v5616_v7  ;;  %vm5618_vm14 = vmmov %vm5614_vm9 }
 0x267   : > { %vm1375_vm3 = vmand %vm5618_vm14, %vm1359_vm5  ;;  %vm5623_vm5 = vcmp.lt.f32.partialorder %v3768_v33, 0.16 }
 0x268   : > { %vm5619_vm0 = vmmov %vm5615_vm13 }
 0x269   : > { %vm1376_vm6 = vmand %vm5619_vm0, %vm1360_vm7 }
 0x26a   : > { %vm4034_vm11 = vmpackc.low %vm1376_vm6, %vm1375_vm3 }
 0x26b   : > { %v5621_v1 = vsel %vm4034_vm11, 4294967295, %v5620_v1  ;;  %vm5626_vm3 = vmmov %vm5622_vm15 }
 0x26c   : > { %vm5627_vm11 = vmmov %vm5623_vm5 }
 0x276   : > { %v4038_v6 = vpop.f32.mrf.mxu0 }
 0x277   : > { %vm1221_vm12 = vcmp.eq.f32.partialorder %v4038_v6, 6.0  ;;  %vm1365_vm2 = vcmp.eq.f32.partialorder %v4038_v6, 8.0  ;;  %vm1149_vm6 = vcmp.eq.f32.partialorder %v4038_v6, 5.0  ;;  %vm933_vm4 = vcmp.eq.f32.partialorder %v4038_v6, 2.0 }
 0x278   : > { %v4040_v13 = vpop.f32.mrf.mxu0  ;;  %vm1237_vm9 = vmand %vm5622_vm15, %vm1221_vm12  ;;  %vm1077_vm1 = vcmp.eq.f32.partialorder %v4038_v6, 4.0 }
 0x279   : > { %vm1381_vm0 = vmand %vm5626_vm3, %vm1365_vm2 }
 0x27a   : > { %v4042_v5 = vpop.f32.mrf.mxu0  ;;  %vm5631_vm2 = vmmov %vm5623_vm5 }
 0x27b   : > { %vm1222_vm8 = vcmp.eq.f32.partialorder %v4042_v5, 6.0  ;;  %vm1366_vm7 = vcmp.eq.f32.partialorder %v4042_v5, 8.0  ;;  %vm1150_vm12 = vcmp.eq.f32.partialorder %v4042_v5, 5.0 }
 0x27c   : > { %vm1238_vm13 = vmand %vm5623_vm5, %vm1222_vm8  ;;  %v4062_v15 = vpop.f32.mrf.mxu0 }
 0x27d   : > { %vm4052_vm14 = vmpackc.low %vm1238_vm13, %vm1237_vm9 }
 0x27e   : > { %v5625_v14 = vsel %vm4052_vm14, 4294967295, %v5624_v14  ;;  %vm1382_vm10 = vmand %vm5627_vm11, %vm1366_vm7 }
 0x27f   : > { %vm4064_vm15 = vmpackc.low %vm1382_vm10, %vm1381_vm0  ;;  %vm5634_vm0 = vcmp.lt.f32.partialorder %v3801_v30, 0.16 }
 0x280   : > { %v5629_v18 = vsel %vm4064_vm15, 4294967295, %v5628_v18  ;;  %vm5630_vm8 = vmmov %vm5626_vm3  ;;  %vm934_vm3 = vcmp.eq.f32.partialorder %v4042_v5, 2.0 }
 0x281   : > { %vm1165_vm9 = vmand %vm5630_vm8, %vm1149_vm6 }
 0x282   : > { %vm1166_vm5 = vmand %vm5631_vm2, %vm1150_vm12 }
 0x283   : > { %vm4078_vm10 = vmpackc.low %vm1166_vm5, %vm1165_vm9 }
 0x284   : > { %v5633_v60 = vsel %vm4078_vm10, 4294967295, %v5632_v60  ;;  %vm5635_vm12 = vmmov %vm5634_vm0 }
 0x285   : > { %vm5638_vm9 = vmmov %vm5634_vm0 }
 0x286   : > { %vm5644_vm15 = vmmov %vm5638_vm9 }
 0x297   : > { %v4070_v19 = vpop.f32.mrf.mxu0 }
 0x298   : > { %vm937_vm13 = vcmp.eq.f32.partialorder %v4070_v19, 2.0  ;;  %vm1081_vm11 = vcmp.eq.f32.partialorder %v4070_v19, 4.0  ;;  %vm865_vm7 = vcmp.eq.f32.partialorder %v4070_v19, 1.0  ;;  %vm1009_vm8 = vcmp.eq.f32.partialorder %v4070_v19, 3.0 }
 0x299   : > { %v4082_v21 = vpop.f32.mrf.mxu0  ;;  %vm953_vm6 = vmand %vm5634_vm0, %vm937_vm13  ;;  %vm5641_vm13 = vcmp.lt.f32.partialorder %v3768_v33, 0.16 }
 0x29a   : > { %vm4089_vm2 = vmand %vm5635_vm12, %vm1081_vm11  ;;  %vm1078_vm11 = vcmp.eq.f32.partialorder %v4042_v5, 4.0 }
 0x29b   : > { %v4094_v23 = vpop.f32.mrf.mxu0  ;;  %vm4098_vm5 = vmand %vm5638_vm9, %vm865_vm7  ;;  %vm5647_vm7 = vcmp.lt.f32.partialorder %v3794_v27, 0.16 }
 0x29c   : > { %vm4104_vm0 = vmand %vm5641_vm13, %vm934_vm3  ;;  %vm938_vm12 = vcmp.eq.f32.partialorder %v4094_v23, 2.0  ;;  %vm1082_vm10 = vcmp.eq.f32.partialorder %v4094_v23, 4.0  ;;  %vm5648_vm3 = vcmp.lt.f32.partialorder %v3766_v31, 0.16 }
 0x29d   : > { %v5643_v26 = vsel %vm4104_vm0, 4294967295, %v5642_v26  ;;  %vm4113_vm14 = vmand %vm5644_vm15, %vm1009_vm8  ;;  %vm866_vm15 = vcmp.eq.f32.partialorder %v4094_v23, 1.0  ;;  %vm5654_vm8 = vcmp.lt.f32.partialorder %v3768_v33, 0.16  ;;  %v4143_v39 = vpop.f32.mrf.mxu0 }
 0x29e   : > { %v5646_v28 = vsel %vm4113_vm14, 4294967295, %v5645_v28  ;;  %vm954_vm9 = vmand %vm5647_vm7, %vm938_vm12 }
 0x29f   : > { %vm4121_vm13 = vmand %vm5648_vm3, %vm933_vm4 }
 0x2a0   : > { %v5650_v62 = vsel %vm4121_vm13, 4294967295, %v5649_v62  ;;  %vm4126_vm0 = vmpackc.low %vm954_vm9, %vm953_vm6  ;;  %vm862_vm6 = vcmp.eq.f32.partialorder %v4042_v5, 1.0 }
 0x2a1   : > { %v5652_v32 = vsel %vm4126_vm0, 4294967295, %v5651_v32  ;;  %vm4133_vm14 = vmand %vm5654_vm8, %vm1078_vm11  ;;  %2941 = vmatprep.subr.msk.bf16.mxu1 %vm4126_vm0, %v5446_v25  ;;  %vm1010_vm11 = vcmp.eq.f32.partialorder %v4094_v23, 3.0 }
 0x2a2   : > { %5653 = vst [vmem:[#allocation16_spill] sm:$0xff] %v5652_v32  ;;  %v5656_v36 = vsel %vm4133_vm14, 4294967295, %v5655_v36  ;;  %vm5657_vm4 = vmmov %vm5647_vm7  ;;  %vm5672_vm14 = vcmp.lt.f32.partialorder %v3751_v3, 0.16  ;;  %v5715_v32 = vmov 0 }
 0x2a3   : > { %vm1098_vm12 = vmand %vm5657_vm4, %vm1082_vm10  ;;  %vm932_vm10 = vcmp.eq.f32.partialorder %v4062_v15, 2.0 }
 0x2a4   : > { %vm4147_vm7 = vmpackc.low %vm1098_vm12, %vm4089_vm2 }
 0x2a5   : > { %v5659_v55 = vsel %vm4147_vm7, 4294967295, %v5658_v55  ;;  %vm5661_vm9 = vmmov %vm5648_vm3  ;;  %2959 = vmatprep.subr.msk.bf16.mxu0 %vm4147_vm7, %v5446_v25  ;;  %vm1006_vm7 = vcmp.eq.f32.partialorder %v4042_v5, 3.0 }
 0x2a6   : > { %5660 = vst [vmem:[#allocation17_spill] sm:$0xff] %v5659_v55  ;;  %vm4154_vm3 = vmand %vm5661_vm9, %vm1077_vm1  ;;  %vm935_vm1 = vcmp.eq.f32.partialorder %v4082_v21, 2.0  ;;  %vm5668_vm9 = vcmp.lt.f32.partialorder %v3768_v33, 0.16  ;;  %v5697_v55 = vmov 0 }
 0x2a7   : > { %v5663_v4 = vsel %vm4154_vm3, 4294967295, %v5662_v4  ;;  %vm5664_vm8 = vmmov %vm5657_vm4  ;;  %vm861_vm4 = vcmp.eq.f32.partialorder %v4038_v6, 1.0 }
 0x2a8   : > { %vm882_vm2 = vmand %vm5664_vm8, %vm866_vm15  ;;  %vm931_vm15 = vcmp.eq.f32.partialorder %v4040_v13, 2.0 }
 0x2a9   : > { %vm4167_vm12 = vmpackc.low %vm882_vm2, %vm4098_vm5  ;;  %vm936_vm2 = vcmp.eq.f32.partialorder %v4143_v39, 2.0 }
 0x2aa   : > { %v5666_v22 = vsel %vm4167_vm12, 4294967295, %v5665_v22  ;;  %vm4174_vm0 = vmand %vm5668_vm9, %vm862_vm6  ;;  %2942 = vmatpush3.bf16.xpose.msk.msra.mxu1 %vm4167_vm12, %v5446_v25  ;;  %vm1076_vm6 = vcmp.eq.f32.partialorder %v4062_v15, 4.0  ;;  %vm5675_vm9 = vnez %v5646_v28  ;;  %vm5679_vm12 = vcmp.lt.f32.partialorder %v3766_v31, 0.16 }
 0x2ab   : > { %5667 = vst [vmem:[#allocation18_spill] sm:$0xff] %v5666_v22  ;;  %v5670_v20 = vsel %vm4174_vm0, 4294967295, %v5669_v20  ;;  %vm5671_vm5 = vmmov %vm5664_vm8  ;;  %v5680_v25 = vmov 0  ;;  %v5685_v28 = vmov 0  ;;  %v5688_v22 = vmov 0 }
 0x2ac   : > { %vm1026_vm8 = vmand %vm5671_vm5, %vm1010_vm11  ;;  %vm1005_vm11 = vcmp.eq.f32.partialorder %v4038_v6, 3.0  ;;  %vm1079_vm5 = vcmp.eq.f32.partialorder %v4082_v21, 4.0 }
 0x2ad   : > { %vm4188_vm3 = vmand %vm5672_vm14, %vm932_vm10  ;;  %vm5683_vm14 = vcmp.lt.f32.partialorder %v3788_v17, 0.16 }
 0x2ae   : > { %v5674_v59 = vsel %vm4188_vm3, 4294967295, %v5673_v59  ;;  %vm4195_vm0 = vmpackc.low %vm1026_vm8, %vm5675_vm9  ;;  %vm5684_vm8 = vcmp.lt.f32.partialorder %v3768_v33, 0.16  ;;  %vm1075_vm3 = vcmp.eq.f32.partialorder %v4040_v13, 4.0 }
 0x2af   : > { %v5677_v10 = vsel %vm4195_vm0, 4294967295, %v5676_v10  ;;  %vm4201_vm13 = vmand %vm5679_vm12, %vm861_vm4  ;;  %2960 = vmatpush3.bf16.xpose.msk.msra.mxu0 %vm4195_vm0, %v5682_v8  ;;  %vm5687_vm4 = vcmp.lt.f32.partialorder %v3749_v16, 0.16  ;;  %vm5690_vm0 = vcmp.lt.f32.partialorder %v3790_v24, 0.16 }
 0x2b0   : > { %5678 = vst [vmem:[#allocation19_spill] sm:$0xff] %v5677_v10  ;;  %v5681_v25 = vsel %vm4201_vm13, 4294967295, %v5680_v25  ;;  %vm951_vm10 = vmand %vm5683_vm14, %vm935_vm1  ;;  %vm1080_vm1 = vcmp.eq.f32.partialorder %v4143_v39, 4.0  ;;  %vm5691_vm14 = vnez %v5650_v62  ;;  %v5693_v10 = vmov 0 }
 0x2b1   : > { %vm4214_vm9 = vmand %vm5684_vm8, %vm1006_vm7  ;;  %vm5692_vm7 = vnez %v5643_v26  ;;  %v5703_v62 = vmov 0  ;;  %v5707_v26 = vmov 0 }
 0x2b2   : > { %v5686_v28 = vsel %vm4214_vm9, 4294967295, %v5685_v28  ;;  %vm4220_vm12 = vmand %vm5687_vm4, %vm931_vm15  ;;  %vm5696_vm15 = vcmp.lt.f32.partialorder %v3751_v3, 0.16 }
 0x2b3   : > { %v5689_v22 = vsel %vm4220_vm12, 4294967295, %v5688_v22  ;;  %vm952_vm13 = vmand %vm5690_vm0, %vm936_vm2  ;;  %vm5702_vm0 = vcmp.lt.f32.partialorder %v3766_v31, 0.16 }
 0x2b4   : > { %vm4232_vm8 = vmpackc.low %vm5692_vm7, %vm5691_vm14  ;;  %vm860_vm14 = vcmp.eq.f32.partialorder %v4062_v15, 1.0 }
 0x2b5   : > { %v5694_v10 = vsel %vm4232_vm8, 4294967295, %v5693_v10  ;;  %vm4238_vm4 = vmand %vm5696_vm15, %vm1076_vm6  ;;  %vm5705_vm6 = vcmp.lt.f32.partialorder %v3788_v17, 0.16  ;;  %vm5711_vm8 = vnez %v5656_v36  ;;  %v5846_v36 = vmov 0 }
 0x2b6   : > { %5695 = vst [vmem:[#allocation20_spill] sm:$0xff] %v5694_v10  ;;  %v5698_v55 = vsel %vm4238_vm4, 4294967295, %v5697_v55  ;;  %vm4242_vm9 = vmpackc.low %vm952_vm13, %vm951_vm10  ;;  %vm863_vm13 = vcmp.eq.f32.partialorder %v4082_v21, 1.0  ;;  %vm5706_vm10 = vcmp.lt.f32.partialorder %v3749_v16, 0.16 }
 0x2b7   : > { %v5700_v54 = vsel %vm4242_vm9, 4294967295, %v5699_v54  ;;  %vm4248_vm2 = vmand %vm5702_vm0, %vm1005_vm11  ;;  %2943 = vmatprep.subr.msk.bf16.mxu1 %vm4242_vm9, %v5682_v8  ;;  %vm930_vm11 = vcmp.eq.f32.partialorder %v3964_v57, 2.0  ;;  %vm5709_vm0 = vcmp.lt.f32.partialorder %v3790_v24, 0.16  ;;  %vm5710_vm9 = vnez %v5663_v4 }
 0x2b8   : > { %5701 = vst [vmem:[#allocation21_spill] sm:$0xff] %v5700_v54  ;;  %v5704_v62 = vsel %vm4248_vm2, 4294967295, %v5703_v62  ;;  %vm1095_vm7 = vmand %vm5705_vm6, %vm1079_vm5  ;;  %vm864_vm2 = vcmp.eq.f32.partialorder %v4143_v39, 1.0  ;;  %v5712_v54 = vmov 0  ;;  %v5723_v4 = vmov 0 }
 0x2b9   : > { %vm4261_vm15 = vmand %vm5706_vm10, %vm1075_vm3  ;;  %vm859_vm3 = vcmp.eq.f32.partialorder %v4040_v13, 1.0  ;;  %vm5718_vm10 = vcmp.lt.f32.partialorder %v3751_v3, 0.16 }
 0x2ba   : > { %v5708_v26 = vsel %vm4261_vm15, 4294967295, %v5707_v26  ;;  %vm1096_vm4 = vmand %vm5709_vm0, %vm1080_vm1  ;;  %vm929_vm1 = vcmp.eq.f32.partialorder %v3960_v56, 2.0 }
 0x2bb   : > { %vm4273_vm5 = vmpackc.low %vm5711_vm8, %vm5710_vm9  ;;  %vm5721_vm9 = vcmp.lt.f32.partialorder %v3788_v17, 0.16 }
 0x2bc   : > { %v5713_v54 = vsel %vm4273_vm5, 4294967295, %v5712_v54  ;;  %vm4278_vm6 = vmpackc.low %vm1096_vm4, %vm1095_vm7  ;;  %vm1007_vm4 = vcmp.eq.f32.partialorder %v4082_v21, 3.0  ;;  %vm5722_vm7 = vcmp.lt.f32.partialorder %v3733_v38, 0.16  ;;  %vm1008_vm5 = vcmp.eq.f32.partialorder %v4143_v39, 3.0 }
 0x2bd   : > { %5714 = vst [vmem:[#allocation22_spill] sm:$0xff] %v5713_v54  ;;  %v5716_v32 = vsel %vm4278_vm6, 4294967295, %v5715_v32  ;;  %vm4284_vm15 = vmand %vm5718_vm10, %vm860_vm14  ;;  %2961 = vmatprep.subr.msk.bf16.mxu0 %vm4278_vm6, %v5682_v8  ;;  %vm1074_vm14 = vcmp.eq.f32.partialorder %v3964_v57, 4.0  ;;  %vm5725_vm10 = vcmp.lt.f32.partialorder %v3790_v24, 0.16 }
 0x2be   : > { %5717 = vst [vmem:[#allocation23_spill] sm:$0xff] %v5716_v32  ;;  %v5720_v12 = vsel %vm4284_vm15, 4294967295, %v5719_v12  ;;  %vm879_vm8 = vmand %vm5721_vm9, %vm863_vm13  ;;  %vm5726_vm6 = vcmp.lt.f32.partialorder %v3749_v16, 0.16  ;;  %v5729_v32 = vmov 0  ;;  %vm5732_vm9 = vnez %v5670_v20 }
 0x2bf   : > { %vm4297_vm0 = vmand %vm5722_vm7, %vm930_vm11  ;;  %vm5731_vm11 = vnez %v5681_v25  ;;  %v5741_v20 = vmov 0  ;;  %v5744_v25 = vmov 0 }
 0x2c0   : > { %v5724_v4 = vsel %vm4297_vm0, 4294967295, %v5723_v4  ;;  %vm880_vm15 = vmand %vm5725_vm10, %vm864_vm2  ;;  %vm5735_vm2 = vcmp.lt.f32.partialorder %v3731_v35, 0.16  ;;  %vm1225_vm0 = vcmp.eq.f32.partialorder %v4070_v19, 6.0 }
 0x2c1   : > { %vm4307_vm12 = vmand %vm5726_vm6, %vm859_vm3  ;;  %vm1073_vm3 = vcmp.eq.f32.partialorder %v3960_v56, 4.0 }
 0x2c2   : > { %vm4311_vm13 = vmpackc.low %vm880_vm15, %vm879_vm8  ;;  %vm5738_vm15 = vcmp.lt.f32.partialorder %v3788_v17, 0.16  ;;  %vm5739_vm8 = vnez %v5689_v22  ;;  %v5748_v22 = vmov 0 }
 0x2c3   : > { %v5730_v32 = vsel %vm4311_vm13, 4294967295, %v5729_v32  ;;  %vm4319_vm7 = vmpackc.low %vm5732_vm9, %vm5731_vm11  ;;  %2944 = vmatpush3.bf16.xpose.msk.msra.mxu1 %vm4311_vm13, %v5682_v8  ;;  %vm5740_vm11 = vnez %v5674_v59  ;;  %vm5746_vm13 = vcmp.lt.f32.partialorder %v3790_v24, 0.16  ;;  %v5752_v59 = vmov 0 }
 0x2c4   : > { %v5734_v45 = vsel %vm4319_vm7, 4294967295, %v5733_v45  ;;  %vm4325_vm10 = vmand %vm5735_vm2, %vm929_vm1  ;;  %vm5743_vm1 = vcmp.lt.f32.partialorder %v3733_v38, 0.16  ;;  %vm1153_vm7 = vcmp.eq.f32.partialorder %v4070_v19, 5.0 }
 0x2c5   : > { %v5737_v53 = vsel %vm4325_vm10, 4294967295, %v5736_v53  ;;  %vm1023_vm6 = vmand %vm5738_vm15, %vm1007_vm4  ;;  %vm5747_vm4 = vnez %v5694_v10  ;;  %vm858_vm15 = vcmp.eq.f32.partialorder %v3964_v57, 1.0  ;;  %v5755_v10 = vmov 0 }
 0x2c6   : > { %vm4339_vm9 = vmpackc.low %vm5740_vm11, %vm5739_vm8  ;;  %2945 = vmatprep.subr.msk.bf16.mxu1 %vm5747_vm4, %v5682_v8  ;;  %vm1226_vm8 = vcmp.eq.f32.partialorder %v4094_v23, 6.0 }
 0x2c7   : > { %v5742_v20 = vsel %vm4339_vm9, 4294967295, %v5741_v20  ;;  %vm4345_vm2 = vmand %vm5743_vm1, %vm1074_vm14  ;;  %vm5750_vm14 = vnez %v5704_v62  ;;  %vm5751_vm1 = vnez %v5686_v28  ;;  %v5759_v28 = vmov 0 }
 0x2c8   : > { %v5745_v25 = vsel %vm4345_vm2, 4294967295, %v5744_v25  ;;  %vm1024_vm10 = vmand %vm5746_vm13, %vm1008_vm5  ;;  %vm5754_vm5 = vcmp.lt.f32.partialorder %v3731_v35, 0.16  ;;  %v5764_v62 = vmov 0  ;;  %vm1370_vm9 = vcmp.eq.f32.partialorder %v4094_v23, 8.0 }
 0x2c9   : > { %vm4357_vm11 = vmpackc.low %vm1024_vm10, %vm1023_vm6  ;;  %vm5757_vm10 = vnez %v5708_v26  ;;  %vm5758_vm6 = vnez %v5698_v55  ;;  %v5767_v55 = vmov 0  ;;  %v5917_v26 = vld [vmem:[#allocation18_spill] sm:$0xff] }
 0x2ca   : > { %v5749_v22 = vsel %vm4357_vm11, 4294967295, %v5748_v22  ;;  %vm4365_vm2 = vmpackc.low %vm5751_vm1, %vm5750_vm14  ;;  %2962 = vmatpush3.bf16.xpose.msk.msra.mxu0 %vm4357_vm11, %v5682_v8  ;;  %vm857_vm14 = vcmp.eq.f32.partialorder %v3960_v56, 1.0  ;;  %vm5761_vm1 = vcmp.lt.f32.partialorder %v3801_v30, 0.16  ;;  %vm5763_vm11 = vcmp.lt.f32.partialorder %v3733_v38, 0.16 }
 0x2cb   : > { %v5753_v59 = vsel %vm4365_vm2, 4294967295, %v5752_v59  ;;  %vm4371_vm13 = vmand %vm5754_vm5, %vm1073_vm3  ;;  %vm1369_vm5 = vcmp.eq.f32.partialorder %v4070_v19, 8.0 }
 0x2cc   : > { %v5756_v10 = vsel %vm4371_vm13, 4294967295, %v5755_v10  ;;  %vm4382_vm4 = vmpackc.low %vm5758_vm6, %vm5757_vm10  ;;  %vm5762_vm13 = vnez %v5713_v54  ;;  %vm1002_vm10 = vcmp.eq.f32.partialorder %v3964_v57, 3.0  ;;  %vm5766_vm6 = vcmp.lt.f32.partialorder %v3794_v27, 0.16 }
 0x2cd   : > { %v5760_v28 = vsel %vm4382_vm4, 4294967295, %v5759_v28  ;;  %vm1241_vm3 = vmand %vm5761_vm1, %vm1225_vm0  ;;  %2963 = vmatprep.subr.msk.bf16.mxu0 %vm5762_vm13, %v5682_v8  ;;  %vm5769_vm1 = vcmp.lt.f32.partialorder %v3731_v35, 0.16  ;;  %v5774_v57 = vmov 0  ;;  %v5777_v54 = vmov 0 }
 0x2ce   : > { %vm4395_vm2 = vmand %vm5763_vm11, %vm858_vm15  ;;  %vm1001_vm15 = vcmp.eq.f32.partialorder %v3960_v56, 3.0  ;;  %vm5772_vm11 = vcmp.lt.f32.partialorder %v3801_v30, 0.16  ;;  %v5788_v56 = vmov 0 }
 0x2cf   : > { %v5765_v62 = vsel %vm4395_vm2, 4294967295, %v5764_v62  ;;  %vm1242_vm4 = vmand %vm5766_vm6, %vm1226_vm8 }
 0x2d0   : > { %vm4403_vm0 = vmpackc.low %vm1242_vm4, %vm1241_vm3  ;;  %vm5773_vm4 = vnez %v5720_v12  ;;  %v5782_v12 = vmov 0 }
 0x2d1   : > { %v5768_v55 = vsel %vm4403_vm0, 4294967295, %v5767_v55  ;;  %vm4409_vm13 = vmand %vm5769_vm1, %vm857_vm14  ;;  %vm5776_vm14 = vcmp.lt.f32.partialorder %v3733_v38, 0.16  ;;  %v5784_v38 = vmov 0 }
 0x2d2   : > { %vm1385_vm2 = vmand %vm5772_vm11, %vm1369_vm5  ;;  %vm1154_vm5 = vcmp.eq.f32.partialorder %v4094_v23, 5.0  ;;  %vm5779_vm11 = vnez %v5734_v45 }
 0x2d3   : > { %vm4421_vm8 = vmpackc.low %vm5773_vm4, %vm4307_vm12  ;;  %2946 = vmatpush3.bf16.xpose.msk.msra.mxu1 %vm5779_vm11, %v5682_v8  ;;  %vm5780_vm12 = vnez %v5737_v53  ;;  %vm5781_vm4 = vnez %v5724_v4  ;;  %vm5790_vm11 = vcmp.lt.f32.partialorder %v3801_v30, 0.16  ;;  %v5797_v53 = vmov 0 }
 0x2d4   : > { %v5775_v57 = vsel %vm4421_vm8, 4294967295, %v5774_v57  ;;  %vm4427_vm3 = vmand %vm5776_vm14, %vm1002_vm10  ;;  %vm5787_vm14 = vcmp.lt.f32.partialorder %v3731_v35, 0.16  ;;  %v5795_v35 = vmov 0  ;;  %v5826_v4 = vmov 0 }
 0x2d5   : > { %v5778_v54 = vsel %vm4427_vm3, 4294967295, %v5777_v54  ;;  %vm1386_vm1 = vmand %vm5766_vm6, %vm1370_vm9  ;;  %vm5786_vm9 = vnez %v5742_v20  ;;  %vm5792_vm3 = vnez %v5753_v59 }
 0x2d6   : > { %vm4441_vm0 = vmpackc.low %vm5781_vm4, %vm5780_vm12  ;;  %2947 = vmatprep.subr.msk.bf16.mxu1 %vm5786_vm9, %v5682_v8  ;;  %vm1297_vm4 = vcmp.eq.f32.partialorder %v4070_v19, 7.0  ;;  %2964 = vmatpush3.bf16.xpose.msk.msra.mxu0 %vm5792_vm3, %v5682_v8  ;;  %vm5793_vm9 = vnez %v5756_v10  ;;  %v5802_v10 = vmov 0  ;;  %v5815_v19 = vmov 0 }
 0x2d7   : > { %v5783_v12 = vsel %vm4441_vm0, 4294967295, %v5782_v12  ;;  %vm4445_vm10 = vmpackc.low %vm1386_vm1, %vm1385_vm2  ;;  %vm5791_vm2 = vcmp.lt.f32.partialorder %v3794_v27, 0.16 }
 0x2d8   : > { %v5785_v38 = vsel %vm4445_vm10, 4294967295, %v5784_v38  ;;  %vm4454_vm6 = vmand %vm5787_vm14, %vm1001_vm15  ;;  %vm1298_vm10 = vcmp.eq.f32.partialorder %v4094_v23, 7.0  ;;  %vm5794_vm15 = vnez %v5745_v25  ;;  %v5824_v23 = vmov 0 }
 0x2d9   : > { %v5789_v56 = vsel %vm4454_vm6, 4294967295, %v5788_v56  ;;  %vm1169_vm12 = vmand %vm5790_vm11, %vm1153_vm7  ;;  %vm1004_vm11 = vcmp.eq.f32.partialorder %v4062_v15, 3.0  ;;  %vm928_vm6 = vcmp.eq.f32.partialorder %v3966_v58, 2.0  ;;  %v5851_v25 = vmov 0 }
 0x2da   : > { %vm1170_vm1 = vmand %vm5791_vm2, %vm1154_vm5  ;;  %vm5799_vm5 = vnez %v5760_v28  ;;  %vm5800_vm2 = vcmp.lt.f32.partialorder %v3801_v30, 0.16  ;;  %v5806_v30 = vmov 0 }
 0x2db   : > { %vm4471_vm14 = vmpackc.low %vm5794_vm15, %vm5793_vm9  ;;  %2965 = vmatprep.subr.msk.bf16.mxu0 %vm5799_vm5, %v5682_v8  ;;  %vm5801_vm9 = vcmp.lt.f32.partialorder %v3794_v27, 0.16  ;;  %vm5805_vm5 = vnez %v5765_v62  ;;  %2948 = vmatpush3.bf16.xpose.msk.msra.mxu1 %vm4421_vm8, %v5682_v8  ;;  %v5811_v27 = vmov 0  ;;  %v5915_v62 = vld [vmem:[#allocation17_spill] sm:$0xff] }
 0x2dc   : > { %v5796_v35 = vsel %vm4471_vm14, 4294967295, %v5795_v35  ;;  %vm4475_vm7 = vmpackc.low %vm1170_vm1, %vm1169_vm12  ;;  %vm1003_vm14 = vcmp.eq.f32.partialorder %v4040_v13, 3.0  ;;  %vm5804_vm1 = vcmp.lt.f32.partialorder %v3751_v3, 0.16 }
 0x2dd   : > { %v5798_v53 = vsel %vm4475_vm7, 4294967295, %v5797_v53  ;;  %vm1313_vm3 = vmand %vm5800_vm2, %vm1297_vm4  ;;  %vm5809_vm2 = vcmp.lt.f32.partialorder %v3749_v16, 0.16 }
 0x2de   : > { %vm1314_vm15 = vmand %vm5801_vm9, %vm1298_vm10  ;;  %vm5808_vm10 = vcmp.lt.f32.partialorder %v3716_v9, 0.16  ;;  %vm5810_vm9 = vnez %v5783_v12 }
 0x2df   : > { %vm4489_vm12 = vmpackc.low %vm1314_vm15, %vm1313_vm3  ;;  %vm927_vm3 = vcmp.eq.f32.partialorder %v3962_v46, 2.0  ;;  %2949 = vmatprep.subr.msk.bf16.mxu1 %vm5810_vm9, %v5682_v8  ;;  %vm5814_vm15 = vnez %v5778_v54  ;;  %v5819_v54 = vmov 0 }
 0x2e0   : > { %v5803_v10 = vsel %vm4489_vm12, 4294967295, %v5802_v10  ;;  %vm1020_vm7 = vmand %vm5804_vm1, %vm1004_vm11 }
 0x2e1   : > { %vm4499_vm0 = vmpackc.low %vm5805_vm5, %vm4409_vm13  ;;  %vm5813_vm5 = vnez %v5789_v56  ;;  %v5919_v56 = vld [vmem:[#allocation6_spill] sm:$0xff] }
 0x2e2   : > { %v5807_v30 = vsel %vm4499_vm0, 4294967295, %v5806_v30  ;;  %vm944_vm4 = vmand %vm5808_vm10, %vm928_vm6  ;;  %vm1072_vm6 = vcmp.eq.f32.partialorder %v3966_v58, 4.0  ;;  %vm1071_vm10 = vcmp.eq.f32.partialorder %v3962_v46, 4.0 }
 0x2e3   : > { %vm1019_vm11 = vmand %vm5809_vm2, %vm1003_vm14  ;;  %vm5817_vm14 = vcmp.lt.f32.partialorder %v3714_v2, 0.16  ;;  %vm5818_vm2 = vnez %v5796_v35  ;;  %2950 = vmatpush3.bf16.xpose.msk.msra.mxu1 %vm4499_vm0, %v5682_v8 }
 0x2e4   : > { %vm4514_vm13 = vmpackc.low %vm1020_vm7, %vm1019_vm11 }
 0x2e5   : > { %v5812_v27 = vsel %vm4514_vm13, 4294967295, %v5811_v27  ;;  %vm4522_vm1 = vmpackc.low %vm5814_vm15, %vm5813_vm5  ;;  %2966 = vmatpush3.bf16.xpose.msk.msra.mxu0 %vm4514_vm13, %v5682_v8  ;;  %vm856_vm5 = vcmp.eq.f32.partialorder %v3966_v58, 1.0  ;;  %vm5821_vm15 = vcmp.lt.f32.partialorder %v3716_v9, 0.16 }
 0x2e6   : > { %v5816_v19 = vsel %vm4522_vm1, 4294967295, %v5815_v19  ;;  %vm943_vm7 = vmand %vm5817_vm14, %vm927_vm3  ;;  %2967 = vmatprep.subr.msk.bf16.mxu0 %vm5818_vm2, %v5682_v8  ;;  %vm855_vm3 = vcmp.eq.f32.partialorder %v3962_v46, 1.0 }
 0x2e7   : > { %vm4536_vm11 = vmpackc.low %vm944_vm4, %vm943_vm7  ;;  %vm1293_vm7 = vcmp.eq.f32.partialorder %v4038_v6, 7.0  ;;  %v5830_v6 = vmov 0 }
 0x2e8   : > { %v5820_v54 = vsel %vm4536_vm11, 4294967295, %v5819_v54  ;;  %vm1088_vm9 = vmand %vm5821_vm15, %vm1072_vm6  ;;  %2951 = vmatprep.subr.msk.bf16.mxu1 %vm4536_vm11, %v5682_v8  ;;  %vm1143_vm11 = vcmp.eq.f32.partialorder %v3962_v46, 5.0 }
 0x2e9   : > { %vm5822_vm13 = vmmov %vm5817_vm14 }
 0x2ea   : > { %vm1087_vm8 = vmand %vm5822_vm13, %vm1071_vm10  ;;  %vm1294_vm10 = vcmp.eq.f32.partialorder %v4042_v5, 7.0  ;;  %v5922_v5 = vld [vmem:[#allocation19_spill] sm:$0xff] }
 0x2eb   : > { %vm5823_vm14 = vmmov %vm5821_vm15  ;;  %vm1219_vm15 = vcmp.eq.f32.partialorder %v4040_v13, 6.0 }
 0x2ec   : > { %vm872_vm12 = vmand %vm5823_vm14, %vm856_vm5 }
 0x2ed   : > { %vm4551_vm4 = vmpackc.low %vm1088_vm9, %vm1087_vm8  ;;  %2968 = vmatpush3.bf16.xpose.msk.msra.mxu0 %vm4522_vm1, %v5682_v8  ;;  %vm5828_vm8 = vcmp.lt.f32.partialorder %v3766_v31, 0.16  ;;  %vm5832_vm1 = vcmp.lt.f32.partialorder %v3749_v16, 0.16  ;;  %v5920_v31 = vld [vmem:[#allocation21_spill] sm:$0xff] }
 0x2ee   : > { %v5825_v23 = vsel %vm4551_vm4, 4294967295, %v5824_v23  ;;  %vm871_vm6 = vmand %vm5822_vm13, %vm855_vm3  ;;  %2969 = vmatprep.subr.msk.bf16.mxu0 %vm4551_vm4, %v5682_v8  ;;  %vm5829_vm3 = vcmp.lt.f32.partialorder %v3768_v33, 0.16  ;;  %vm1144_vm13 = vcmp.eq.f32.partialorder %v3966_v58, 5.0  ;;  %vm5833_vm4 = vcmp.lt.f32.partialorder %v3751_v3, 0.16 }
 0x2ef   : > { %vm4562_vm5 = vmpackc.low %vm872_vm12, %vm871_vm6  ;;  %vm1220_vm12 = vcmp.eq.f32.partialorder %v4062_v15, 6.0  ;;  %v5837_v33 = vmov 0 }
 0x2f0   : > { %v5827_v4 = vsel %vm4562_vm5, 4294967295, %v5826_v4  ;;  %vm1309_vm9 = vmand %vm5828_vm8, %vm1293_vm7  ;;  %vm1363_vm8 = vcmp.eq.f32.partialorder %v4040_v13, 8.0  ;;  %2952 = vmatpush3.bf16.xpose.msk.msra.mxu1 %vm4562_vm5, %v5682_v8  ;;  %vm5845_vm5 = vnez %v5598_v29 }
 0x2f1   : > { %vm1310_vm14 = vmand %vm5829_vm3, %vm1294_vm10  ;;  %vm1364_vm10 = vcmp.eq.f32.partialorder %v4062_v15, 8.0  ;;  %vm5834_vm3 = vcmp.lt.f32.partialorder %v3716_v9, 0.16 }
 0x2f2   : > { %vm4579_vm6 = vmpackc.low %vm1310_vm14, %vm1309_vm9  ;;  %vm5839_vm9 = vnez %v5538_v37  ;;  %vm1147_vm14 = vcmp.eq.f32.partialorder %v4040_v13, 5.0 }
 0x2f3   : > { %v5831_v6 = vsel %vm4579_vm6, 4294967295, %v5830_v6  ;;  %vm1235_vm7 = vmand %vm5832_vm1, %vm1219_vm15  ;;  %2953 = vmatprep.subr.msk.bf16.mxu1 %vm5839_vm9, %v5682_v8  ;;  %vm1292_vm6 = vcmp.eq.f32.partialorder %v4062_v15, 7.0 }
 0x2f4   : > { %vm1236_vm0 = vmand %vm5833_vm4, %vm1220_vm12  ;;  %vm5840_vm4 = vcmp.lt.f32.partialorder %v3749_v16, 0.16  ;;  %vm5841_vm12 = vcmp.lt.f32.partialorder %v3714_v2, 0.16  ;;  %v5859_v16 = vmov 0 }
 0x2f5   : > { %vm4592_vm2 = vmand %vm5834_vm3, %vm1144_vm13  ;;  %vm1148_vm3 = vcmp.eq.f32.partialorder %v4062_v15, 5.0  ;;  %2970 = vmatpush3.bf16.xpose.msk.msra.mxu0 %vm5845_vm5, %v5682_v8  ;;  %vm1287_vm5 = vcmp.eq.f32.partialorder %v3962_v46, 7.0  ;;  %v5909_v15 = vld [vmem:[#allocation14_spill] sm:$0xff]  ;;  %v6043_v46 = vld [vmem:[#allocation8_spill] sm:$0xff] }
 0x2f6   : > { %vm4599_vm1 = vmpackc.low %vm1236_vm0, %vm1235_vm7  ;;  %vm5844_vm0 = vcmp.lt.f32.partialorder %v3751_v3, 0.16  ;;  %v5865_v3 = vmov 0 }
 0x2f7   : > { %v5838_v33 = vsel %vm4599_vm1, 4294967295, %v5837_v33  ;;  %vm1379_vm15 = vmand %vm5840_vm4, %vm1363_vm8  ;;  %vm5848_vm8 = vnez %v5540_v40 }
 0x2f8   : > { %vm4611_vm13 = vmand %vm5841_vm12, %vm1143_vm11  ;;  %2971 = vmatprep.subr.msk.bf16.mxu0 %vm5848_vm8, %v5682_v8  ;;  %vm1291_vm12 = vcmp.eq.f32.partialorder %v4040_v13, 7.0  ;;  %vm5854_vm8 = vnez %v5542_v41  ;;  %v5857_v13 = vmov 0 }
 0x2f9   : > { %vm1380_vm7 = vmand %vm5844_vm0, %vm1364_vm10  ;;  %2954 = vmatpush3.bf16.xpose.msk.msra.mxu1 %vm5854_vm8, %v5682_v8 }
 0x2fa   : > { %vm4621_vm9 = vmpackc.low %vm1380_vm7, %vm1379_vm15 }
 0x2fb   : > { %v5847_v36 = vsel %vm4621_vm9, 4294967295, %v5846_v36  ;;  %vm5849_vm11 = vmmov %vm5840_vm4 }
 0x2fc   : > { %vm1163_vm4 = vmand %vm5849_vm11, %vm1147_vm14 }
 0x2fd   : > { %vm5850_vm10 = vmmov %vm5844_vm0 }
 0x2fe   : > { %vm1164_vm0 = vmand %vm5850_vm10, %vm1148_vm3  ;;  %vm5856_vm3 = vnez %v5547_v44 }
 0x2ff   : > { %vm4634_vm1 = vmpackc.low %vm1164_vm0, %vm1163_vm4  ;;  %2955 = vmatprep.subr.msk.bf16.mxu1 %vm5856_vm3, %v5682_v8  ;;  %vm5862_vm0 = vcmp.lt.f32.partialorder %v3714_v2, 0.16  ;;  %v5876_v2 = vmov 0 }
 0x300   : > { %v5852_v25 = vsel %vm4634_vm1, 4294967295, %v5851_v25  ;;  %vm5853_vm15 = vmmov %vm5849_vm11 }
 0x301   : > { %vm1307_vm7 = vmand %vm5853_vm15, %vm1291_vm12 }
 0x302   : > { %vm5855_vm14 = vmmov %vm5850_vm10  ;;  %vm1288_vm10 = vcmp.eq.f32.partialorder %v3966_v58, 7.0 }
 0x303   : > { %vm1308_vm11 = vmand %vm5855_vm14, %vm1292_vm6  ;;  %vm5861_vm6 = vnez %v5544_v43  ;;  %vm5864_vm14 = vcmp.lt.f32.partialorder %v3716_v9, 0.16  ;;  %v5878_v9 = vmov 0 }
 0x304   : > { %vm4649_vm4 = vmpackc.low %vm1308_vm11, %vm1307_vm7  ;;  %2972 = vmatpush3.bf16.xpose.msk.msra.mxu0 %vm5861_vm6, %v5682_v8  ;;  %vm5863_vm7 = vnez %v5550_v49  ;;  %vm1367_vm6 = vcmp.eq.f32.partialorder %v4082_v21, 8.0 }
 0x305   : > { %v5858_v13 = vsel %vm4649_vm4, 4294967295, %v5857_v13  ;;  %vm4658_vm12 = vmpackc.low %vm4592_vm2, %vm4611_vm13  ;;  %2973 = vmatprep.subr.msk.bf16.mxu0 %vm5863_vm7, %v5682_v8  ;;  %vm5868_vm2 = vnez %v5553_v50  ;;  %vm5869_vm13 = vnez %v5768_v55  ;;  %vm5873_vm7 = vcmp.lt.f32.partialorder %v3788_v17, 0.16  ;;  %v5905_v17 = vld [vmem:[#allocation12_spill] sm:$0xff] }
 0x306   : > { %v5860_v16 = vsel %vm4658_vm12, 4294967295, %v5859_v16  ;;  %vm1303_vm15 = vmand %vm5862_vm0, %vm1287_vm5  ;;  %2956 = vmatpush3.bf16.xpose.msk.msra.mxu1 %vm5868_vm2, %v5682_v8  ;;  %vm1224_vm5 = vcmp.eq.f32.partialorder %v4143_v39, 6.0  ;;  %vm5870_vm0 = vnez %v5556_v0 }
 0x307   : > { %vm1304_vm11 = vmand %vm5864_vm14, %vm1288_vm10  ;;  %2977 = vmatprep.subr.msk.bf16.mxu1 %vm5869_vm13, %v5682_v8  ;;  %vm1223_vm10 = vcmp.eq.f32.partialorder %v4082_v21, 6.0  ;;  %vm1368_vm14 = vcmp.eq.f32.partialorder %v4143_v39, 8.0 }
 0x308   : > { %vm4672_vm3 = vmpackc.low %vm1304_vm11, %vm1303_vm15  ;;  %vm5871_vm15 = vnez %v5785_v38  ;;  %vm5872_vm11 = vcmp.lt.f32.partialorder %v3790_v24, 0.16  ;;  %v5907_v24 = vld [vmem:[#allocation13_spill] sm:$0xff] }
 0x309   : > { %v5866_v3 = vsel %vm4672_vm3, 4294967295, %v5865_v3  ;;  %vm1240_vm2 = vmand %vm5872_vm11, %vm1224_vm5  ;;  %vm5875_vm3 = vnez %v5798_v53  ;;  %vm1152_vm5 = vcmp.eq.f32.partialorder %v4143_v39, 5.0 }
 0x30a   : > { %5867 = vst [vmem:[#allocation24_spill] sm:$0xff] %v5866_v3  ;;  %vm1239_vm13 = vmand %vm5873_vm7, %vm1223_vm10 }
 0x30b   : > { %vm1383_vm10 = vmand %vm5873_vm7, %vm1367_vm6 }
 0x30c   : > { %2974 = vmatpush3.bf16.xpose.msk.msra.mxu0 %vm5870_vm0, %v5682_v8  ;;  %vm5874_vm0 = vmmov %vm5872_vm11 }
 0x30d   : > { %2995 = vmatprep.subr.msk.bf16.mxu0 %vm5871_vm15, %v5682_v8  ;;  %2958 = vmatmul.mubr.bf16.vlgmr.msra.gmra.mxu1 %v3490_v11  ;;  %vm1384_vm8 = vmand %vm5874_vm0, %vm1368_vm14 }
 0x30e   : > { %2978 = vmatpush3.bf16.xpose.msk.msra.mxu1 %vm5875_vm3, %v5682_v8  ;;  %vm4702_vm15 = vmpackc.low %vm1240_vm2, %vm1239_vm13  ;;  %2993 = vmatprep.mubr.bf16.mxu1 %v3490_v11  ;;  %vm1151_vm2 = vcmp.eq.f32.partialorder %v4082_v21, 5.0  ;;  %vm5880_vm13 = vnez %v5803_v10  ;;  %vm5887_vm3 = vnez %v5625_v14 }
 0x30f   : > { %v5877_v2 = vsel %vm4702_vm15, 4294967295, %v5876_v2  ;;  %2979 = vmatprep.subr.msk.bf16.mxu1 %vm4702_vm15, %v5682_v8  ;;  %vm4714_vm0 = vmpackc.low %vm1384_vm8, %vm1383_vm10  ;;  %vm1296_vm8 = vcmp.eq.f32.partialorder %v4143_v39, 7.0  ;;  %v5913_v39 = vld [vmem:[#allocation15_spill] sm:$0xff] }
 0x310   : > { %v5879_v9 = vsel %vm4714_vm0, 4294967295, %v5878_v9  ;;  %vm5881_vm14 = vmmov %vm5872_vm11 }
 0x311   : > { %vm1168_vm11 = vmand %vm5881_vm14, %vm1152_vm5 }
 0x312   : > { %vm5882_vm6 = vmmov %vm5873_vm7 }
 0x313   : > { %2976 = vmatmul.mubr.bf16.vlgmr.msra.gmra.mxu0 %v3490_v11  ;;  %vm1167_vm7 = vmand %vm5882_vm6, %vm1151_vm2 }
 0x314   : > { %2996 = vmatpush3.bf16.xpose.msk.msra.mxu0 %vm5880_vm13, %v5682_v8  ;;  %3011 = vmatprep.mubr.bf16.mxu0 %v3490_v11  ;;  %vm4731_vm10 = vmpackc.low %vm1168_vm11, %vm1167_vm7  ;;  %vm1295_vm13 = vcmp.eq.f32.partialorder %v4082_v21, 7.0  ;;  %vm5891_vm11 = vnez %v5633_v60  ;;  %vm5896_vm7 = vnez %v5610_v47  ;;  %v5911_v21 = vld [vmem:[#allocation16_spill] sm:$0xff] }
 0x315   : > { %2997 = vmatprep.subr.msk.bf16.mxu0 %vm4714_vm0, %v5682_v8  ;;  %vm5885_vm15 = vmmov %vm5881_vm14 }
 0x316   : > { %vm1312_vm5 = vmand %vm5885_vm15, %vm1296_vm8  ;;  %2980 = vmatpush3.bf16.xpose.msk.msra.mxu1 %vm4731_vm10, %v5682_v8  ;;  %vm5890_vm15 = vnez %v5629_v18  ;;  %vm5894_vm8 = vnez %v5602_v34 }
 0x317   : > { %vm5886_vm14 = vmmov %vm5882_vm6  ;;  %2981 = vmatprep.subr.msk.bf16.mxu1 %vm5887_vm3, %v5682_v8  ;;  %vm5895_vm6 = vnez %v5606_v61 }
 0x318   : > { %vm1311_vm0 = vmand %vm5886_vm14, %vm1295_vm13  ;;  %vm5892_vm13 = vnez %v5838_v33  ;;  %vm5898_vm14 = vnez %v5613_v63 }
 0x319   : > { %vm4746_vm2 = vmpackc.low %vm1312_vm5, %vm1311_vm0  ;;  %vm5893_vm0 = vnez %v5831_v6  ;;  %vm5897_vm5 = vnez %v5617_v7 }
 0x31c   : > { %2998 = vmatpush3.bf16.xpose.msk.msra.mxu0 %vm4746_vm2, %v5682_v8 }
 0x31d   : > { %2999 = vmatprep.subr.msk.bf16.mxu0 %vm5890_vm15, %v5682_v8 }
 0x31e   : > { %2982 = vmatpush3.bf16.xpose.msk.msra.mxu1 %vm5891_vm11, %v5682_v8 }
 0x31f   : > { %2983 = vmatprep.subr.msk.bf16.mxu1 %vm5892_vm13, %v5682_v8 }
 0x324   : > { %3000 = vmatpush3.bf16.xpose.msk.msra.mxu0 %vm5893_vm0, %v5682_v8 }
 0x325   : > { %3001 = vmatprep.subr.msk.bf16.mxu0 %vm4621_vm9, %v5682_v8 }
 0x326   : > { %2984 = vmatpush3.bf16.xpose.msk.msra.mxu1 %vm4634_vm1, %v5682_v8 }
 0x327   : > { %2985 = vmatprep.subr.msk.bf16.mxu1 %vm5894_vm8, %v5682_v8  ;;  %vm5899_vm8 = vnez %v5621_v1 }
 0x32c   : > { %3002 = vmatpush3.bf16.xpose.msk.msra.mxu0 %vm4649_vm4, %v5682_v8 }
 0x32d   : > { %3003 = vmatprep.subr.msk.bf16.mxu0 %vm5895_vm6, %v5682_v8  ;;  %vm5900_vm6 = vnez %v5560_v48 }
 0x32e   : > { %2986 = vmatpush3.bf16.xpose.msk.msra.mxu1 %vm5896_vm7, %v5682_v8  ;;  %vm5901_vm7 = vnez %v5866_v3 }
 0x32f   : > { %2987 = vmatprep.subr.msk.bf16.mxu1 %vm5897_vm5, %v5682_v8  ;;  %vm5902_vm5 = vnez %v5565_v51 }
 0x334   : > { %3004 = vmatpush3.bf16.xpose.msk.msra.mxu0 %vm5898_vm14, %v5682_v8  ;;  %vm5903_vm14 = vnez %v5570_v52 }
 0x335   : > { %3005 = vmatprep.subr.msk.bf16.mxu0 %vm5899_vm8, %v5682_v8  ;;  %vm5904_vm8 = vnez %v5579_v42 }
 0x336   : > { %2988 = vmatpush3.bf16.xpose.msk.msra.mxu1 %vm4658_vm12, %v5682_v8  ;;  %vm5906_vm12 = vnez %v5905_v17 }
 0x337   : > { %2989 = vmatprep.subr.msk.bf16.mxu1 %vm5900_vm6, %v5682_v8  ;;  %vm5908_vm6 = vnez %v5907_v24 }
 0x33c   : > { %3006 = vmatpush3.bf16.xpose.msk.msra.mxu0 %vm5901_vm7, %v5682_v8  ;;  %vm5910_vm7 = vnez %v5909_v15 }
 0x33d   : > { %3007 = vmatprep.subr.msk.bf16.mxu0 %vm5902_vm5, %v5682_v8  ;;  %vm5912_vm5 = vnez %v5911_v21 }
 0x33e   : > { %2990 = vmatpush3.bf16.xpose.msk.msra.mxu1 %vm5903_vm14, %v5682_v8  ;;  %vm5914_vm14 = vnez %v5913_v39 }
 0x33f   : > { %2991 = vmatprep.subr.msk.bf16.mxu1 %vm5904_vm8, %v5682_v8  ;;  %vm5916_vm8 = vnez %v5915_v62  ;;  %v5924_v62 = vld [vmem:[#allocation23_spill] sm:$0xff] }
 0x344   : > { %3008 = vmatpush3.bf16.xpose.msk.msra.mxu0 %vm5906_vm12, %v5682_v8  ;;  %vm5932_vm12 = vnez %v5734_v45 }
 0x345   : > { %3009 = vmatprep.subr.msk.bf16.mxu0 %vm5908_vm6, %v5682_v8  ;;  %vm5918_vm6 = vnez %v5917_v26  ;;  %v5927_v26 = vld [vmem:[#allocation20_spill] sm:$0xff] }
 0x346   : > { %2992 = vmatpush3.bf16.xpose.msk.msra.mxu1 %vm5910_vm7, %v5682_v8  ;;  %vm5921_vm7 = vnez %v5920_v31 }
 0x347   : > { %3013 = vmatprep.subr.msk.bf16.mxu1 %vm5912_vm5, %v5682_v8  ;;  %vm5928_vm5 = vnez %v5927_v26 }
 0x34c   : > { %3010 = vmatpush3.bf16.xpose.msk.msra.mxu0 %vm5914_vm14, %v5682_v8  ;;  %vm5923_vm14 = vnez %v5922_v5  ;;  %v5930_v5 = vld [vmem:[#allocation22_spill] sm:$0xff] }
 0x34d   : > { %3031 = vmatprep.subr.msk.bf16.mxu0 %vm5916_vm8, %v5682_v8  ;;  %2994 = vmatmul.mubr.bf16.vlgmr.msra.gmra.mxu1 %v3490_v11  ;;  %vm5925_vm8 = vnez %v5924_v62 }
 0x34e   : > { %3014 = vmatpush3.bf16.xpose.msk.msra.mxu1 %vm5918_vm6, %v5682_v8  ;;  %3029 = vmatprep.mubr.bf16.mxu1 %v5919_v56  ;;  %vm5926_vm6 = vnez %v5730_v32 }
 0x34f   : > { %3015 = vmatprep.subr.msk.bf16.mxu1 %vm5921_vm7, %v5682_v8  ;;  %vm5929_vm7 = vnez %v5749_v22 }
 0x353   : > { %3012 = vmatmul.mubr.bf16.vlgmr.msra.gmra.mxu0 %v3490_v11 }
 0x354   : > { %3032 = vmatpush3.bf16.xpose.msk.msra.mxu0 %vm5923_vm14, %v5682_v8  ;;  %3047 = vmatprep.mubr.bf16.mxu0 %v5919_v56  ;;  %vm5931_vm14 = vnez %v5930_v5 }
 0x355   : > { %3033 = vmatprep.subr.msk.bf16.mxu0 %vm5925_vm8, %v5682_v8  ;;  %vm5933_vm8 = vnez %v5742_v20 }
 0x356   : > { %3016 = vmatpush3.bf16.xpose.msk.msra.mxu1 %vm5926_vm6, %v5682_v8  ;;  %vm5934_vm6 = vnez %v5753_v59 }
 0x357   : > { %3017 = vmatprep.subr.msk.bf16.mxu1 %vm5928_vm5, %v5682_v8  ;;  %vm5935_vm5 = vnez %v5760_v28 }
 0x35c   : > { %3034 = vmatpush3.bf16.xpose.msk.msra.mxu0 %vm5929_vm7, %v5682_v8  ;;  %vm5936_vm7 = vnez %v5775_v57 }
 0x35d   : > { %3035 = vmatprep.subr.msk.bf16.mxu0 %vm5931_vm14, %v5682_v8  ;;  %vm5937_vm14 = vnez %v5783_v12 }
 0x35e   : > { %3018 = vmatpush3.bf16.xpose.msk.msra.mxu1 %vm5932_vm12, %v5682_v8  ;;  %vm5938_vm12 = vnez %v5812_v27 }
 0x35f   : > { %3019 = vmatprep.subr.msk.bf16.mxu1 %vm5933_vm8, %v5682_v8  ;;  %vm5939_vm8 = vnez %v5796_v35 }
 0x364   : > { %3036 = vmatpush3.bf16.xpose.msk.msra.mxu0 %vm5934_vm6, %v5682_v8  ;;  %vm5940_vm6 = vnez %v5807_v30 }
 0x365   : > { %3037 = vmatprep.subr.msk.bf16.mxu0 %vm5935_vm5, %v5682_v8  ;;  %vm5941_vm5 = vnez %v5820_v54 }
 0x366   : > { %3020 = vmatpush3.bf16.xpose.msk.msra.mxu1 %vm5936_vm7, %v5682_v8  ;;  %vm5942_vm7 = vnez %v5816_v19 }
 0x367   : > { %3021 = vmatprep.subr.msk.bf16.mxu1 %vm5937_vm14, %v5682_v8  ;;  %vm5943_vm14 = vnez %v5825_v23 }
 0x36c   : > { %3038 = vmatpush3.bf16.xpose.msk.msra.mxu0 %vm5938_vm12, %v5682_v8  ;;  %vm5944_vm12 = vnez %v5827_v4 }
 0x36d   : > { %3039 = vmatprep.subr.msk.bf16.mxu0 %vm5939_vm8, %v5682_v8  ;;  %vm5945_vm8 = vnez %v5538_v37 }
 0x36e   : > { %3022 = vmatpush3.bf16.xpose.msk.msra.mxu1 %vm5940_vm6, %v5682_v8  ;;  %vm5946_vm6 = vnez %v5598_v29 }
 0x36f   : > { %3023 = vmatprep.subr.msk.bf16.mxu1 %vm5941_vm5, %v5682_v8  ;;  %vm5947_vm5 = vnez %v5540_v40 }
 0x374   : > { %3040 = vmatpush3.bf16.xpose.msk.msra.mxu0 %vm5942_vm7, %v5682_v8  ;;  %vm5948_vm7 = vnez %v5542_v41 }
 0x375   : > { %3041 = vmatprep.subr.msk.bf16.mxu0 %vm5943_vm14, %v5682_v8  ;;  %vm5949_vm14 = vnez %v5547_v44 }
 0x376   : > { %3024 = vmatpush3.bf16.xpose.msk.msra.mxu1 %vm5944_vm12, %v5682_v8  ;;  %vm5950_vm12 = vnez %v5544_v43 }
 0x377   : > { %3025 = vmatprep.subr.msk.bf16.mxu1 %vm5945_vm8, %v5682_v8  ;;  %vm5951_vm8 = vnez %v5550_v49 }
 0x37c   : > { %3042 = vmatpush3.bf16.xpose.msk.msra.mxu0 %vm5946_vm6, %v5682_v8  ;;  %vm5952_vm6 = vnez %v5553_v50 }
 0x37d   : > { %3043 = vmatprep.subr.msk.bf16.mxu0 %vm5947_vm5, %v5682_v8  ;;  %vm5953_vm5 = vnez %v5768_v55 }
 0x37e   : > { %3026 = vmatpush3.bf16.xpose.msk.msra.mxu1 %vm5948_vm7, %v5682_v8  ;;  %vm5954_vm7 = vnez %v5556_v0 }
 0x37f   : > { %3027 = vmatprep.subr.msk.bf16.mxu1 %vm5949_vm14, %v5682_v8  ;;  %vm5955_vm14 = vnez %v5785_v38 }
 0x384   : > { %3044 = vmatpush3.bf16.xpose.msk.msra.mxu0 %vm5950_vm12, %v5682_v8 }
 0x385   : > { %3045 = vmatprep.subr.msk.bf16.mxu0 %vm5951_vm8, %v5682_v8  ;;  %vm5956_vm8 = vnez %v5798_v53 }
 0x386   : > { %3028 = vmatpush3.bf16.xpose.msk.msra.mxu1 %vm5952_vm6, %v5682_v8  ;;  %vm5957_vm6 = vnez %v5877_v2 }
 0x387   : > { %3049 = vmatprep.subr.msk.bf16.mxu1 %vm5953_vm5, %v5682_v8 }
 0x38c   : > { %3046 = vmatpush3.bf16.xpose.msk.msra.mxu0 %vm5954_vm7, %v5682_v8  ;;  %vm5958_vm7 = vnez %v5803_v10 }
 0x38d   : > { %3067 = vmatprep.subr.msk.bf16.mxu0 %vm5955_vm14, %v5682_v8  ;;  %3030 = vmatmul.mubr.bf16.vlgmr.msra.gmra.mxu1 %v5919_v56  ;;  %vm5959_vm14 = vnez %v5879_v9 }
 0x38e   : > { %3050 = vmatpush3.bf16.xpose.msk.msra.mxu1 %vm5956_vm8, %v5682_v8  ;;  %3065 = vmatprep.mubr.bf16.mxu1 %v5919_v56 }
 0x38f   : > { %3051 = vmatprep.subr.msk.bf16.mxu1 %vm5957_vm6, %v5682_v8 }
 0x393   : > { %3048 = vmatmul.mubr.bf16.vlgmr.msra.gmra.mxu0 %v5919_v56 }
 0x394   : > { %3068 = vmatpush3.bf16.xpose.msk.msra.mxu0 %vm5958_vm7, %v5682_v8  ;;  %3083 = vmatprep.mubr.bf16.mxu0 %v5919_v56 }
 0x395   : > { %3069 = vmatprep.subr.msk.bf16.mxu0 %vm5959_vm14, %v5682_v8 }
 0x396   : > { %3052 = vmatpush3.bf16.xpose.msk.msra.mxu1 %vm4731_vm10, %v5682_v8 }
 0x397   : > { %3053 = vmatprep.subr.msk.bf16.mxu1 %vm5887_vm3, %v5682_v8 }
 0x39c   : > { %3070 = vmatpush3.bf16.xpose.msk.msra.mxu0 %vm4746_vm2, %v5682_v8 }
 0x39d   : > { %3071 = vmatprep.subr.msk.bf16.mxu0 %vm5890_vm15, %v5682_v8  ;;  %vm5960_vm15 = vnez %v5602_v34 }
 0x39e   : > { %3054 = vmatpush3.bf16.xpose.msk.msra.mxu1 %vm5891_vm11, %v5682_v8 }
 0x39f   : > { %3055 = vmatprep.subr.msk.bf16.mxu1 %vm5892_vm13, %v5682_v8  ;;  %vm5961_vm13 = vnez %v5606_v61 }
 0x3a4   : > { %3072 = vmatpush3.bf16.xpose.msk.msra.mxu0 %vm5893_vm0, %v5682_v8  ;;  %vm5962_vm0 = vnez %v5610_v47 }
 0x3a5   : > { %3073 = vmatprep.subr.msk.bf16.mxu0 %vm4621_vm9, %v5682_v8  ;;  %vm5963_vm9 = vnez %v5617_v7 }
 0x3a6   : > { %3056 = vmatpush3.bf16.xpose.msk.msra.mxu1 %vm4634_vm1, %v5682_v8  ;;  %vm5964_vm1 = vnez %v5613_v63 }
 0x3a7   : > { %3057 = vmatprep.subr.msk.bf16.mxu1 %vm5960_vm15, %v5682_v8  ;;  %vm5965_vm15 = vnez %v5621_v1 }
 0x3ac   : > { %3074 = vmatpush3.bf16.xpose.msk.msra.mxu0 %vm4649_vm4, %v5682_v8  ;;  %vm5966_vm4 = vnez %v5860_v16 }
 0x3ad   : > { %3075 = vmatprep.subr.msk.bf16.mxu0 %vm5961_vm13, %v5682_v8  ;;  %vm5967_vm13 = vnez %v5560_v48  ;;  %v272_v48 = vunpack.c.l.bf16 %v3490_v11  ;;  %v5978_v11 = vld [vmem:[#allocation17_spill] sm:$0xff] }
 0x3ae   : > { %3058 = vmatpush3.bf16.xpose.msk.msra.mxu1 %vm5962_vm0, %v5682_v8  ;;  %vm5968_vm0 = vnez %v5866_v3 }
 0x3af   : > { %3059 = vmatprep.subr.msk.bf16.mxu1 %vm5963_vm9, %v5682_v8  ;;  %vm5969_vm9 = vnez %v5565_v51  ;;  %v5974_v51 = vld [vmem:[#allocation7_spill] sm:$0xff] }
 0x3b0   : > { %v273_v3 = vsub.f32 %v5974_v51, %v272_v48  ;;  %v5981_v48 = vld [vmem:[#allocation18_spill] sm:$0xff] }
 0x3b4   : > { %3076 = vmatpush3.bf16.xpose.msk.msra.mxu0 %vm5964_vm1, %v5682_v8  ;;  %vm5970_vm1 = vnez %v5570_v52 }
 0x3b5   : > { %3077 = vmatprep.subr.msk.bf16.mxu0 %vm5965_vm15, %v5682_v8  ;;  %vm5971_vm15 = vnez %v5579_v42 }
 0x3b6   : > { %3060 = vmatpush3.bf16.xpose.msk.msra.mxu1 %vm5966_vm4, %v5682_v8  ;;  %vm5972_vm4 = vnez %v5905_v17  ;;  %v5027_v17 = vpack.c.bf16 %v273_v3, %v273_v3 }
 0x3b7   : > { %3061 = vmatprep.subr.msk.bf16.mxu1 %vm5967_vm13, %v5682_v8  ;;  %vm5993_vm13 = vnez %v5742_v20 }
 0x3bc   : > { %3078 = vmatpush3.bf16.xpose.msk.msra.mxu0 %vm5968_vm0, %v5682_v8  ;;  %vm5973_vm0 = vnez %v5907_v24 }
 0x3bd   : > { %3079 = vmatprep.subr.msk.bf16.mxu0 %vm5969_vm9, %v5682_v8  ;;  %vm5975_vm9 = vnez %v5909_v15 }
 0x3be   : > { %3062 = vmatpush3.bf16.xpose.msk.msra.mxu1 %vm5970_vm1, %v5682_v8  ;;  %vm5976_vm1 = vnez %v5911_v21  ;;  %v5985_v21 = vld [vmem:[#allocation19_spill] sm:$0xff] }
 0x3bf   : > { %3063 = vmatprep.subr.msk.bf16.mxu1 %vm5971_vm15, %v5682_v8  ;;  %vm5977_vm15 = vnez %v5913_v39 }
 0x3c4   : > { %3080 = vmatpush3.bf16.xpose.msk.msra.mxu0 %vm5972_vm4, %v5682_v8  ;;  %vm5979_vm4 = vnez %v5978_v11 }
 0x3c5   : > { %3081 = vmatprep.subr.msk.bf16.mxu0 %vm5973_vm0, %v5682_v8  ;;  %vm5991_vm0 = vnez %v5930_v5 }
 0x3c6   : > { %3064 = vmatpush3.bf16.xpose.msk.msra.mxu1 %vm5975_vm9, %v5682_v8  ;;  %vm5982_vm9 = vnez %v5981_v48 }
 0x3c7   : > { %3085 = vmatprep.subr.msk.bf16.mxu1 %vm5976_vm1, %v5682_v8  ;;  %vm5984_vm1 = vnez %v5920_v31 }
 0x3cc   : > { %3082 = vmatpush3.bf16.xpose.msk.msra.mxu0 %vm5977_vm15, %v5682_v8  ;;  %vm5989_vm15 = vnez %v5927_v26 }
 0x3cd   : > { %3103 = vmatprep.subr.msk.bf16.mxu0 %vm5979_vm4, %v5682_v8  ;;  %v5032_v24 = vpop.f32.mrf.mxu1  ;;  %3066 = vmatmul.mubr.bf16.vlgmr.msra.gmra.mxu1 %v5919_v56  ;;  %vm5986_vm4 = vnez %v5985_v21 }
 0x3ce   : > { %5980 = vst [vmem:[#allocation14_spill] sm:$0xff] %v5032_v24  ;;  %3086 = vmatpush3.bf16.xpose.msk.msra.mxu1 %vm5982_vm9, %v5682_v8  ;;  %3101 = vmatprep.mubr.bf16.mxu1 %v5027_v17  ;;  %vm5987_vm9 = vnez %v5924_v62 }
 0x3cf   : > { %v5039_v51 = vpop.f32.mrf.mxu1  ;;  %3087 = vmatprep.subr.msk.bf16.mxu1 %vm5984_vm1, %v5682_v8  ;;  %vm5988_vm1 = vnez %v5730_v32 }
 0x3d0   : > { %5983 = vst [vmem:[#allocation16_spill] sm:$0xff] %v5039_v51 }
 0x3d1   : > { %v1465_v11 = vpop.f32.mrf.mxu1 }
 0x3d3   : > { %v5044_v3 = vpop.f32.mrf.mxu0  ;;  %3084 = vmatmul.mubr.bf16.vlgmr.msra.gmra.mxu0 %v5919_v56  ;;  %v1466_v51 = vpop.f32.mrf.mxu1 }
 0x3d4   : > { %3104 = vmatpush3.bf16.xpose.msk.msra.mxu0 %vm5986_vm4, %v5682_v8  ;;  %3119 = vmatprep.mubr.bf16.mxu0 %v5027_v17  ;;  %vm5990_vm4 = vnez %v5749_v22 }
 0x3d5   : > { %v5051_v48 = vpop.f32.mrf.mxu0  ;;  %3105 = vmatprep.subr.msk.bf16.mxu0 %vm5987_vm9, %v5682_v8  ;;  %vm5992_vm9 = vnez %v5734_v45  ;;  %v6027_v45 = vld [vmem:[#allocation10_spill] sm:$0xff] }
 0x3d6   : > { %3088 = vmatpush3.bf16.xpose.msk.msra.mxu1 %vm5988_vm1, %v5682_v8  ;;  %vm5994_vm1 = vnez %v5753_v59 }
 0x3d7   : > { %v1506_v31 = vpop.f32.mrf.mxu0  ;;  %3089 = vmatprep.subr.msk.bf16.mxu1 %vm5989_vm15, %v5682_v8  ;;  %vm5995_vm15 = vnez %v5760_v28 }
 0x3d9   : > { %v1507_v24 = vpop.f32.mrf.mxu0 }
 0x3dc   : > { %3106 = vmatpush3.bf16.xpose.msk.msra.mxu0 %vm5990_vm4, %v5682_v8  ;;  %vm5996_vm4 = vnez %v5775_v57 }
 0x3dd   : > { %3107 = vmatprep.subr.msk.bf16.mxu0 %vm5991_vm0, %v5682_v8  ;;  %vm5997_vm0 = vnez %v5783_v12  ;;  %v3380_v12 = vmov 1983009808  }
 0x3de   : > { %3090 = vmatpush3.bf16.xpose.msk.msra.mxu1 %vm5992_vm9, %v5682_v8  ;;  %vm5998_vm9 = vnez %v5812_v27 }
 0x3df   : > { %3091 = vmatprep.subr.msk.bf16.mxu1 %vm5993_vm13, %v5682_v8  ;;  %vm5999_vm13 = vnez %v5796_v35  ;;  %v6041_v35 = vld [vmem:[#allocation14_spill] sm:$0xff] }
 0x3e4   : > { %3108 = vmatpush3.bf16.xpose.msk.msra.mxu0 %vm5994_vm1, %v5682_v8  ;;  %vm6000_vm1 = vnez %v5807_v30  ;;  %v6042_v30 = vld [vmem:[#allocation16_spill] sm:$0xff] }
 0x3e5   : > { %3109 = vmatprep.subr.msk.bf16.mxu0 %vm5995_vm15, %v5682_v8  ;;  %vm6001_vm15 = vnez %v5820_v54 }
 0x3e6   : > { %3092 = vmatpush3.bf16.xpose.msk.msra.mxu1 %vm5996_vm4, %v5682_v8  ;;  %vm6002_vm4 = vnez %v5816_v19 }
 0x3e7   : > { %3093 = vmatprep.subr.msk.bf16.mxu1 %vm5997_vm0, %v5682_v8  ;;  %vm6003_vm0 = vnez %v5825_v23 }
 0x3ec   : > { %3110 = vmatpush3.bf16.xpose.msk.msra.mxu0 %vm5998_vm9, %v5682_v8  ;;  %vm6004_vm9 = vnez %v5827_v4 }
 0x3ed   : > { %3111 = vmatprep.subr.msk.bf16.mxu0 %vm5999_vm13, %v5682_v8  ;;  %vm6005_vm13 = vnez %v5538_v37 }
 0x3ee   : > { %3094 = vmatpush3.bf16.xpose.msk.msra.mxu1 %vm6000_vm1, %v5682_v8  ;;  %vm6006_vm1 = vnez %v5598_v29  ;;  %v6029_v29 = vld [vmem:[#allocation24_spill] sm:$0xff] }
 0x3ef   : > { %3095 = vmatprep.subr.msk.bf16.mxu1 %vm6001_vm15, %v5682_v8  ;;  %vm6007_vm15 = vnez %v5540_v40 }
 0x3f4   : > { %3112 = vmatpush3.bf16.xpose.msk.msra.mxu0 %vm6002_vm4, %v5682_v8  ;;  %vm6008_vm4 = vnez %v5542_v41 }
 0x3f5   : > { %3113 = vmatprep.subr.msk.bf16.mxu0 %vm6003_vm0, %v5682_v8  ;;  %vm6009_vm0 = vnez %v5547_v44 }
 0x3f6   : > { %3096 = vmatpush3.bf16.xpose.msk.msra.mxu1 %vm6004_vm9, %v5682_v8  ;;  %vm6010_vm9 = vnez %v5550_v49 }
 0x3f7   : > { %3097 = vmatprep.subr.msk.bf16.mxu1 %vm6005_vm13, %v5682_v8  ;;  %vm6011_vm13 = vnez %v5553_v50 }
 0x3fc   : > { %3114 = vmatpush3.bf16.xpose.msk.msra.mxu0 %vm6006_vm1, %v5682_v8  ;;  %vm6012_vm1 = vnez %v5556_v0 }
 0x3fd   : > { %3115 = vmatprep.subr.msk.bf16.mxu0 %vm6007_vm15, %v5682_v8  ;;  %vm6013_vm15 = vnez %v5785_v38  ;;  %v1930_v38 = vunpack.c.l.s4 %v3380_v12 }
 0x3fe   : > { %3098 = vmatpush3.bf16.xpose.msk.msra.mxu1 %vm6008_vm4, %v5682_v8  ;;  %vm6024_vm4 = vnez %v5613_v63 }
 0x3ff   : > { %3099 = vmatprep.subr.msk.bf16.mxu1 %vm6009_vm0, %v5682_v8  ;;  %vm6025_vm0 = vnez %v5621_v1  ;;  %v1931_v23 = vunpack.c.0.s8 %v1930_v38 }
 0x401   : > { %v1934_v58 = vsub.s32 %v1931_v23, %v6043_v46 }
 0x404   : > { %3116 = vmatpush3.bf16.xpose.msk.msra.mxu0 %vm5950_vm12, %v5682_v8  ;;  %vm6014_vm12 = vnez %v5629_v18 }
 0x405   : > { %3117 = vmatprep.subr.msk.bf16.mxu0 %vm6010_vm9, %v5682_v8  ;;  %vm6026_vm9 = vnez %v5860_v16 }
 0x406   : > { %3100 = vmatpush3.bf16.xpose.msk.msra.mxu1 %vm6011_vm13, %v5682_v8  ;;  %vm6028_vm13 = vnez %v6027_v45  ;;  %v6044_v45 = vld [vmem:[#allocation5_spill] sm:$0xff] }
 0x407   : > { %3121 = vmatprep.subr.msk.bf16.mxu1 %vm5953_vm5, %v5682_v8  ;;  %vm6022_vm5 = vnez %v5610_v47  ;;  %v6037_v47 = vld [vmem:[#allocation13_spill] sm:$0xff] }
 0x40c   : > { %3118 = vmatpush3.bf16.xpose.msk.msra.mxu0 %vm6012_vm1, %v5682_v8  ;;  %vm6030_vm1 = vnez %v6029_v29  ;;  %v2127_v29 = vcombine.high %v6044_v45, %v6044_v45 }
 0x40d   : > { %3139 = vmatprep.subr.msk.bf16.mxu0 %vm6013_vm15, %v5682_v8  ;;  %v5140_v37 = vpop.f32.mrf.mxu1  ;;  %3102 = vmatmul.mubr.bf16.vlgmr.msra.gmra.mxu1 %v5027_v17 }
 0x40e   : > { %3122 = vmatpush3.bf16.xpose.msk.msra.mxu1 %vm5956_vm8, %v5682_v8  ;;  %3137 = vmatprep.mubr.bf16.mxu1 %v5027_v17  ;;  %vm6015_vm8 = vnez %v5838_v33 }
 0x40f   : > { %v5147_v40 = vpop.f32.mrf.mxu1  ;;  %3123 = vmatprep.subr.msk.bf16.mxu1 %vm5957_vm6, %v5682_v8  ;;  %vm6019_vm6 = vnez %v5602_v34  ;;  %v6031_v34 = vld [vmem:[#allocation11_spill] sm:$0xff] }
 0x410   : > { %vm6032_vm15 = vnez %v6031_v34 }
 0x411   : > { %v1547_v43 = vpop.f32.mrf.mxu1 }
 0x412   : > { %v3381_v43 = vmov 1966171168  }
 0x413   : > { %v5152_v41 = vpop.f32.mrf.mxu0  ;;  %3120 = vmatmul.mubr.bf16.vlgmr.msra.gmra.mxu0 %v5027_v17  ;;  %v1548_v49 = vpop.f32.mrf.mxu1 }
 0x414   : > { %3140 = vmatpush3.bf16.xpose.msk.msra.mxu0 %vm5958_vm7, %v5682_v8  ;;  %3155 = vmatprep.mubr.bf16.mxu0 %v5027_v17  ;;  %vm6021_vm7 = vnez %v5606_v61  ;;  %v6035_v61 = vld [vmem:[#allocation12_spill] sm:$0xff]  ;;  %v2129_v49 = vunpack.c.l.s4 %v3381_v43 }
 0x415   : > { %v5159_v44 = vpop.f32.mrf.mxu0  ;;  %3141 = vmatprep.subr.msk.bf16.mxu0 %vm5959_vm14, %v5682_v8  ;;  %vm6023_vm14 = vnez %v5617_v7 }
 0x416   : > { %3124 = vmatpush3.bf16.xpose.msk.msra.mxu1 %vm4731_vm10, %v5682_v8  ;;  %vm6016_vm10 = vnez %v5831_v6 }
 0x417   : > { %v1588_v50 = vpop.f32.mrf.mxu0  ;;  %3125 = vmatprep.subr.msk.bf16.mxu1 %vm5887_vm3, %v5682_v8  ;;  %vm6017_vm3 = vnez %v5847_v36 }
 0x418   : > { %v2130_v50 = vunpack.c.0.s8 %v2129_v49 }
 0x419   : > { %v1589_v0 = vpop.f32.mrf.mxu0 }
 0x41a   : > { %v2133_v0 = vsub.s32 %v2130_v50, %v6043_v46 }
 0x41c   : > { %3142 = vmatpush3.bf16.xpose.msk.msra.mxu0 %vm4746_vm2, %v5682_v8  ;;  %vm6018_vm2 = vnez %v5852_v25  ;;  %v2134_v34 = vrot.slane %v6044_v45, %v2133_v0 }
 0x41d   : > { %3143 = vmatprep.subr.msk.bf16.mxu0 %vm6014_vm12, %v5682_v8  ;;  %vm6033_vm12 = vnez %v5570_v52 }
 0x41e   : > { %3126 = vmatpush3.bf16.xpose.msk.msra.mxu1 %vm5891_vm11, %v5682_v8  ;;  %vm6020_vm11 = vnez %v5858_v13  ;;  %v5265_v38 = vrot.slane %v2134_v34, %v2133_v0 }
 0x41f   : > { %3127 = vmatprep.subr.msk.bf16.mxu1 %vm6015_vm8, %v5682_v8  ;;  %vm6034_vm8 = vnez %v5579_v42 }
 0x424   : > { %3144 = vmatpush3.bf16.xpose.msk.msra.mxu0 %vm6016_vm10, %v5682_v8  ;;  %vm6036_vm10 = vnez %v6035_v61 }
 0x425   : > { %3145 = vmatprep.subr.msk.bf16.mxu0 %vm6017_vm3, %v5682_v8  ;;  %vm6038_vm3 = vnez %v6037_v47 }
 0x426   : > { %3128 = vmatpush3.bf16.xpose.msk.msra.mxu1 %vm6018_vm2, %v5682_v8  ;;  %vm6039_vm2 = vnez %v5909_v15 }
 0x427   : > { %3129 = vmatprep.subr.msk.bf16.mxu1 %vm6019_vm6, %v5682_v8  ;;  %vm6040_vm6 = vnez %v5913_v39 }
 0x42c   : > { %3146 = vmatpush3.bf16.xpose.msk.msra.mxu0 %vm6020_vm11, %v5682_v8 }
 0x42d   : > { %3147 = vmatprep.subr.msk.bf16.mxu0 %vm6021_vm7, %v5682_v8 }
 0x42e   : > { %3130 = vmatpush3.bf16.xpose.msk.msra.mxu1 %vm6022_vm5, %v5682_v8 }
 0x42f   : > { %3131 = vmatprep.subr.msk.bf16.mxu1 %vm6023_vm14, %v5682_v8 }
 0x434   : > { %3148 = vmatpush3.bf16.xpose.msk.msra.mxu0 %vm6024_vm4, %v5682_v8 }
 0x435   : > { %3149 = vmatprep.subr.msk.bf16.mxu0 %vm6025_vm0, %v5682_v8 }
 0x436   : > { %3132 = vmatpush3.bf16.xpose.msk.msra.mxu1 %vm6026_vm9, %v5682_v8 }
 0x437   : > { %3133 = vmatprep.subr.msk.bf16.mxu1 %vm6028_vm13, %v5682_v8 }
 0x43c   : > { %3150 = vmatpush3.bf16.xpose.msk.msra.mxu0 %vm6030_vm1, %v5682_v8 }
 0x43d   : > { %3151 = vmatprep.subr.msk.bf16.mxu0 %vm6032_vm15, %v5682_v8 }
 0x43e   : > { %3134 = vmatpush3.bf16.xpose.msk.msra.mxu1 %vm6033_vm12, %v5682_v8 }
 0x43f   : > { %3135 = vmatprep.subr.msk.bf16.mxu1 %vm6034_vm8, %v5682_v8 }
 0x444   : > { %3152 = vmatpush3.bf16.xpose.msk.msra.mxu0 %vm6036_vm10, %v5682_v8 }
 0x445   : > { %3153 = vmatprep.subr.msk.bf16.mxu0 %vm6038_vm3, %v5682_v8 }
 0x446   : > { %3136 = vmatpush3.bf16.xpose.msk.msra.mxu1 %vm6039_vm2, %v5682_v8 }
 0x44c   : > { %3154 = vmatpush3.bf16.xpose.msk.msra.mxu0 %vm6040_vm6, %v5682_v8 }
 0x44d   : > { %v1625_v52 = vpop.f32.mrf.mxu1  ;;  %3138 = vmatmul.mubr.bf16.vlgmr.msra.gmra.mxu1 %v5027_v17 }
 0x44e   : > { %v1626_v53 = vadd.f32 %v1625_v52, %v6041_v35  ;;  %v3382_v52 = vmov 1934713408  }
 0x44f   : > { %v1627_v42 = vpop.f32.mrf.mxu1 }
 0x450   : > { %v1628_v27 = vadd.f32 %v1627_v42, %v6042_v30  ;;  %v1994_v42 = vunpack.c.l.s4 %v3382_v52 }
 0x451   : > { %v1629_v7 = vpop.f32.mrf.mxu1 }
 0x453   : > { %v1666_v63 = vpop.f32.mrf.mxu0  ;;  %3156 = vmatmul.mubr.bf16.vlgmr.msra.gmra.mxu0 %v5027_v17  ;;  %v1630_v14 = vpop.f32.mrf.mxu1 }
 0x454   : > { %v1667_v54 = vadd.f32 %v1666_v63, %v5044_v3 }
 0x455   : > { %v1668_v1 = vpop.f32.mrf.mxu0 }
 0x456   : > { %v1669_v36 = vadd.f32 %v1668_v1, %v5051_v48 }
 0x457   : > { %v1670_v18 = vpop.f32.mrf.mxu0 }
 0x458   : > { %v2141_v18 = vrot.slane %v2127_v29, %v2133_v0 }
 0x459   : > { %v1671_v60 = vpop.f32.mrf.mxu0 }
 0x45a   : > { %v2142_v60 = vcombine.high %v2134_v34, %v2134_v34 }
 0x48d   : > { %v1707_v32 = vpop.f32.mrf.mxu1 }
 0x48e   : > { %v1708_v61 = vadd.f32 %v1707_v32, %v5140_v37  ;;  %v1995_v37 = vunpack.c.0.s8 %v1994_v42  ;;  %v6045_v42 = vld [vmem:[#allocation9_spill] sm:$0xff] }
 0x48f   : > { %v1709_v20 = vpop.f32.mrf.mxu1 }
 0x490   : > { %v1710_v7 = vadd.f32 %v1709_v20, %v5147_v40  ;;  %v5267_v40 = vrot.slane %v2142_v60, %v2133_v0 }
 0x491   : > { %v1711_v59 = vpop.f32.mrf.mxu1 }
 0x493   : > { %v1748_v22 = vpop.f32.mrf.mxu0  ;;  %v1712_v55 = vpop.f32.mrf.mxu1 }
 0x494   : > { %v1749_v63 = vadd.f32 %v1748_v22, %v5152_v41  ;;  %v2143_v22 = vcombine.high %v2141_v18, %v2141_v18 }
 0x495   : > { %v1750_v28 = vpop.f32.mrf.mxu0 }
 0x496   : > { %v1751_v55 = vadd.f32 %v1750_v28, %v5159_v44  ;;  %v2172_v44 = vcombine.high %v5265_v38, %v5265_v38  ;;  %v1998_v28 = vsub.s32 %v1995_v37, %v6043_v46 }
 0x497   : > { %v1752_v57 = vpop.f32.mrf.mxu0 }
 0x499   : > { %v1753_v8 = vpop.f32.mrf.mxu0 }
 0x4cd   : > { %v1789_v10 = vpop.f32.mrf.mxu1 }
 0x4ce   : > { %v1919_v19 = vadd.f32 %v1789_v10, %v1626_v53 }
 0x4cf   : > { %v1791_v4 = vpop.f32.mrf.mxu1 }
 0x4d0   : > { %v1920_v33 = vadd.f32 %v1791_v4, %v1628_v27 }
 0x4d1   : > { %v1793_v13 = vpop.f32.mrf.mxu1 }
 0x4d2   : > { %v2174_v13 = vcombine.high %v5267_v40, %v5267_v40 }
 0x4d3   : > { %v1830_v6 = vpop.f32.mrf.mxu0  ;;  %v1794_v24 = vpop.f32.mrf.mxu1 }
 0x4d4   : > { %v1921_v25 = vadd.f32 %v1830_v6, %v1667_v54  ;;  %v5269_v54 = vrot.slane %v2141_v18, %v2133_v0 }
 0x4d5   : > { %v1832_v16 = vpop.f32.mrf.mxu0 }
 0x4d6   : > { %v1927_v2 = vcombine.low %v1919_v19, %v1921_v25  ;;  %v1928_v9 = vcombine.high %v1919_v19, %v1921_v25  ;;  %v1922_v17 = vadd.f32 %v1832_v16, %v1669_v36  ;;  %v2069_v19 = vpop.permute.xlu1 %2068  ;;  %v5274_v25 = vrot.slane %v2143_v22, %v2133_v0 }
 0x4d7   : > { %v1834_v15 = vpop.f32.mrf.mxu0  ;;  %v2070_v16 = vrot.slane %v2069_v19, 1  ;;  %v2072_v46 = vrot.slane %v2069_v19, 3  ;;  %v2074_v49 = vrot.slane %v2069_v19, 5  ;;  %v2075_v50 = vrot.slane %v2069_v19, 6 }
 0x4d8   : > { %v1943_v39 = vcombine.low %v1920_v33, %v1922_v17  ;;  %v1944_v62 = vcombine.high %v1920_v33, %v1922_v17  ;;  %v1935_v56 = vrot.slane %v1927_v2, %v1934_v58  ;;  %v5249_v5 = vrot.slane %v1928_v9, %v1934_v58 }
 0x4d9   : > { %v1835_v26 = vpop.f32.mrf.mxu0  ;;  %v2071_v2 = vrot.slane %v2069_v19, 2  ;;  %v2173_v52 = vcombine.high %v5269_v54, %v5269_v54 }
 0x4da   : > { %v1951_v51 = vrot.slane %v1943_v39, %v1934_v58  ;;  %v5251_v3 = vrot.slane %v1944_v62, %v1934_v58  ;;  %v2073_v26 = vrot.slane %v2069_v19, 4 }
 0x4dc   : > { %v1991_v21 = vcombine.low %v1935_v56, %v1951_v51  ;;  %v1992_v11 = vcombine.high %v1935_v56, %v1951_v51  ;;  %v2007_v48 = vcombine.low %v5249_v5, %v5251_v3  ;;  %v2008_v31 = vcombine.high %v5249_v5, %v5251_v3 }
 0x4de   : > { %v1999_v39 = vrot.slane %v1991_v21, %v1998_v28  ;;  %v2006_v62 = vrot.slane %v1992_v11, %v1998_v28  ;;  %v2015_v3 = vrot.slane %v2007_v48, %v1998_v28  ;;  %v2022_v43 = vrot.slane %v2008_v31, %v1998_v28 }
 0x4df   : > { %v2182_v48 = vrot.slane %v5267_v40, %v6045_v42  ;;  %v2194_v31 = vrot.slane %v5269_v54, %v6045_v42 }
 0x50d   : > { %v1871_v47 = vpop.f32.mrf.mxu1 }
 0x50e   : > { %v1923_v1 = vadd.f32 %v1871_v47, %v1708_v61 }
 0x50f   : > { %v1873_v14 = vpop.f32.mrf.mxu1 }
 0x510   : > { %v1924_v8 = vadd.f32 %v1873_v14, %v1710_v7  ;;  %v2186_v7 = vrot.slane %v2172_v44, %v6045_v42  ;;  %v2198_v14 = vrot.slane %v5274_v25, %v6045_v42 }
 0x511   : > { %v1875_v12 = vpop.f32.mrf.mxu1 }
 0x513   : > { %v1912_v59 = vpop.f32.mrf.mxu0  ;;  %v1876_v41 = vpop.f32.mrf.mxu1 }
 0x514   : > { %v1925_v57 = vadd.f32 %v1912_v59, %v1749_v63  ;;  %v2178_v63 = vrot.slane %v5265_v38, %v6045_v42  ;;  %v2202_v41 = vrot.slane %v2173_v52, %v6045_v42 }
 0x515   : > { %v1914_v32 = vpop.f32.mrf.mxu0 }
 0x516   : > { %v1959_v35 = vcombine.low %v1923_v1, %v1925_v57  ;;  %v1960_v53 = vcombine.high %v1923_v1, %v1925_v57  ;;  %v1926_v10 = vadd.f32 %v1914_v32, %v1751_v55  ;;  %v2190_v1 = vrot.slane %v2174_v13, %v6045_v42 }
 0x517   : > { %v1916_v20 = vpop.f32.mrf.mxu0 }
 0x518   : > { %v1975_v30 = vcombine.low %v1924_v8, %v1926_v10  ;;  %v1976_v27 = vcombine.high %v1924_v8, %v1926_v10  ;;  %v1967_v4 = vrot.slane %v1959_v35, %v1934_v58  ;;  %v1974_v6 = vrot.slane %v1960_v53, %v1934_v58 }
 0x519   : > { %v1917_v23 = vpop.f32.mrf.mxu0 }
 0x51a   : > { %v1983_v33 = vrot.slane %v1975_v30, %v1934_v58  ;;  %v1990_v36 = vrot.slane %v1976_v27, %v1934_v58 }
 0x51c   : > { %v2023_v9 = vcombine.low %v1967_v4, %v1983_v33  ;;  %v2024_v17 = vcombine.high %v1967_v4, %v1983_v33  ;;  %v2039_v24 = vcombine.low %v1974_v6, %v1990_v36  ;;  %v2040_v15 = vcombine.high %v1974_v6, %v1990_v36 }
 0x51e   : > { %v2031_v56 = vrot.slane %v2023_v9, %v1998_v28  ;;  %v2038_v5 = vrot.slane %v2024_v17, %v1998_v28  ;;  %v2047_v58 = vrot.slane %v2039_v24, %v1998_v28  ;;  %v2054_v51 = vrot.slane %v2040_v15, %v1998_v28 }
 0x520   : > { %v2055_v0 = vcombine.low %v1999_v39, %v2031_v56  ;;  %v2056_v45 = vcombine.high %v1999_v39, %v2031_v56  ;;  %v2057_v29 = vcombine.low %v2006_v62, %v2038_v5  ;;  %v2058_v34 = vcombine.high %v2006_v62, %v2038_v5 }
 0x521   : > { %v2059_v61 = vcombine.low %v2015_v3, %v2047_v58  ;;  %v2060_v47 = vcombine.high %v2015_v3, %v2047_v58  ;;  %v2061_v21 = vcombine.low %v2022_v43, %v2054_v51  ;;  %v2062_v11 = vcombine.high %v2022_v43, %v2054_v51 }
 0x523   : > { %vm5293_vm11 = vcmp.gt.f32.partialorder %v2062_v11, 0.5 }
 0x524   : > { %v2083_v60 = vsel %vm5293_vm11, %v2055_v0, %v2069_v19  ;;  %v2084_v59 = vsel %vm5293_vm11, %v2056_v45, %v2070_v16  ;;  %v2085_v55 = vsel %vm5293_vm11, %v2057_v29, %v2071_v2  ;;  %v2086_v57 = vsel %vm5293_vm11, %v2058_v34, %v2072_v46 }
 0x525   : > { %v2087_v8 = vsel %vm5293_vm11, %v2059_v61, %v2073_v26  ;;  %v2088_v12 = vsel %vm5293_vm11, %v2060_v47, %v2074_v49  ;;  %v2089_v38 = vsel %vm5293_vm11, %v2061_v21, %v2075_v50  ;;  %v2093_v37 = vrot.slane %v2083_v60, %v6045_v42 }
 0x526   : > { %v2097_v32 = vrot.slane %v2084_v59, %v6045_v42  ;;  %v2101_v35 = vrot.slane %v2085_v55, %v6045_v42  ;;  %v2105_v53 = vrot.slane %v2086_v57, %v6045_v42  ;;  %v2109_v10 = vrot.slane %v2087_v8, %v6045_v42 }
 0x527   : > { %v2113_v22 = vrot.slane %v2088_v12, %v6045_v42  ;;  %v2117_v40 = vrot.slane %v2089_v38, %v6045_v42  ;;  %v2118_v20 = vsel %vm5293_vm11, %v2055_v0, %v2093_v37 }
 0x528   : > { %v2119_v30 = vsel %vm5293_vm11, %v2056_v45, %v2097_v32  ;;  %v2120_v27 = vsel %vm5293_vm11, %v2057_v29, %v2101_v35  ;;  %v2121_v19 = vsel %vm5293_vm11, %v2058_v34, %v2105_v53  ;;  %v2122_v54 = vsel %vm5293_vm11, %v2059_v61, %v2109_v10 }
 0x529   : > { %v2123_v44 = vsel %vm5293_vm11, %v2060_v47, %v2113_v22  ;;  %v2124_v28 = vsel %vm5293_vm11, %v2061_v21, %v2117_v40  ;;  %v2210_v23 = vsub.f32 %v2118_v20, %v2178_v63  ;;  %v2211_v4 = vsub.f32 %v2119_v30, %v2182_v48 }
 0x52a   : > { %v2212_v6 = vsub.f32 %v2120_v27, %v2186_v7  ;;  %v2213_v33 = vsub.f32 %v2121_v19, %v2190_v1  ;;  %v2214_v36 = vsub.f32 %v2122_v54, %v2194_v31  ;;  %v2215_v25 = vsub.f32 %v2123_v44, %v2198_v14 }
 0x52b   : > { %v2216_v13 = vsub.f32 %v2124_v28, %v2202_v41  ;;  %2217 = vst [vmem:[%s209_s15] sm:$0xff] %v2210_v23  ;;  %2218 = vst [vmem:[%s209_s15 + $0x8] sm:$0xff] %v2211_v4 }
 0x52c   : > { %2219 = vst [vmem:[%s209_s15 + $0x10] sm:$0xff] %v2212_v6  ;;  %2220 = vst [vmem:[%s209_s15 + $0x18] sm:$0xff] %v2213_v33 }
 0x52d   : > { %2221 = vst [vmem:[%s209_s15 + $0x20] sm:$0xff] %v2214_v36  ;;  %2222 = vst [vmem:[%s209_s15 + $0x28] sm:$0xff] %v2215_v25 }
 0x52e   : > { %2223 = vst [vmem:[%s209_s15 + $0x30] sm:$0xff] %v2216_v13 }
 0x52f   : > { %3311 = shalt.err (!%p3308_p5)
}
 0x530   : > { %s3312_s5 = scalar_lea.hbm %s5337_s26, 896  ;;  %s3316_s8 = scalar_lea.hbm %s5391_s3, 1792 }
 0x531   : > { %p3313_p6 = scmp.ne.s32.totalorder %s5337_s26, %s3312_s5  ;;  %p3317_p10 = scmp.lt.s32.totalorder %s5337_s26, %s5391_s3 }
 0x532   : > { %p3318_p11 = scmp.lt.s32.totalorder %s3316_s8, %s3312_s5 }
 0x533   : > { %p3314_p7 = pnand %p3313_p6, %p3446_p4 }
 0x534   : > { %p3319_p12 = por %p3318_p11, %p3317_p10 }
 0x535   : > { %p3315_p9 = pneg %p3314_p7 }
 0x537   : > { %p3320_p13 = pnand %p3319_p12, %p3315_p9 }
 0x539   : > { %3323 = shalt.err (!%p3320_p13)
}
 0x53a   : > { %s3384_s11 = smov 128   ;;  %s3385_s18 = smov 8  }
 0x53b   : > { %3191 = dma.vmem_to_hbm [thread:$0]  (%p3446_p4), %s5339_s19, 896, %s5337_s26, %s5343_s27, %s3384_s11, %s3384_s11, %s3385_s18  }
 0x53c PF: > { %p3197_p0 = scmp.ge.s32.totalorder %s3374_s17, 2  ;;  %s2254_s15 = sand.u32 1, %s3354_s12  }
 0x53d   : > { %s2255_s21 = scalar_lea.sflag [#allocation3], %s2254_s15 }
 0x53e   : > { %p3194_p1 = pnand %p3197_p0, %p3453_p8 }
 0x540   : > { %p3195_p2 = pneg %p3194_p1 }
 0x542   : > { %3349 = dma.done.wait (%p3195_p2), %s2255_s21, 896  }
 0x543   : > { %3351 = vsyncadd (%p3195_p2), %s2255_s21, 4294966400  ;;  %s16_s17 = sadd.s32 1, %s3374_s17   ;;  %s6048_s12 = smov %s3358_s13 }
 0x544   : > { %p13_p3 = scmp.ge.s32.totalorder %s16_s17, 4   ;;  %s6049_s13 = smov %s3362_s14 }
 0x545   : > { %s6050_s14 = smov %s3459_s25  ;;  %s6051_s15 = smov %s3370_s16 }
 0x546   : > { %s6052_s16 = smov %s6054_s20  ;;  %15 = sbr.rel (!%p13_p3) target bundleno = 4 (0x4), region = 73 }
 0x54b   :  { %2260 = vsyncpa [#allocation3], 1 }
 0x54c   :  { %2262 = vsyncpa [#allocation3 + $0x1], 1 }

</bundles_post_ra>
